<compile_context>
chip_gen: v6e
topology: v6e:2x2x1
jax: 0.10.0
libtpu: 0.0.40
codegen_flags: <defaults>
</compile_context>

<pallas_src>
import functools

import jax
import jax.numpy as jnp
from jax.experimental import pallas as pl
from jax.experimental.pallas import tpu as pltpu


def mlp_regression_kernel(x_ref, w1_ref, b1_ref, w2_ref, b2_ref, w3_ref, b3_ref,
                          out_ref):
    """Fused 3-layer MLP regression forward for one batch tile.

    x_ref : (TB, D_pad)     bf16   (streamed, double-buffered by BlockSpec)
    w1_ref: (D_pad, H_pad)  bf16   (VMEM-resident)
    b1_ref: (1, H_pad)      f32
    w2_ref: (H_pad, H_pad)  bf16
    b2_ref: (1, H_pad)      f32
    w3_ref: (1, H_pad)      f32    (final weight as a row -> VPU reduction)
    b3_ref: (1, 1)          f32
    out   : (TB//128, 128)  f32    (lane-dense: batch index = row*128 + lane)
    """
    tb = x_ref.shape[0]
    h_pad = w1_ref.shape[1]

    x = x_ref[...]                       # bf16
    # Biases / final-layer row loaded once per grid step (no inner loop to hoist from).
    b1 = b1_ref[...]
    b2 = b2_ref[...]
    w3 = w3_ref[...]
    b3 = b3_ref[...]

    # Layers 1 & 2: bf16 operands on the MXU, f32 accumulation; bias+ReLU on VPU in f32.
    h1 = jnp.dot(x, w1_ref[...], preferred_element_type=jnp.float32)
    h1 = jnp.maximum(h1 + b1, 0.0)
    h2 = jnp.dot(h1.astype(jnp.bfloat16), w2_ref[...],
                 preferred_element_type=jnp.float32)
    h2 = jnp.maximum(h2 + b2, 0.0)

    # Layer 3 (out_features == 1): elementwise multiply + row-reduce on VPU/XLU instead
    # of an N=1 MXU matmul.  Leading-dim split keeps the 128-lane minor dim, so the
    # result is stored lane-dense (full vst, no masked stores).
    hw = (h2 * w3).reshape(tb // 128, 128, h_pad)      # (TB//128, 128, H_pad)
    y = jnp.sum(hw, axis=-1) + b3                      # (TB//128, 128), + (1,1) bcast
    out_ref[...] = y.astype(out_ref.dtype)


def _round_up(n, m):
    return pl.cdiv(n, m) * m


@functools.partial(jax.jit, static_argnames=("tb",))
def deep_regression_forward(x, params, tb=1024):
    """Batch-tiled fused forward.  Pads B/D_in/H with zeros (exactly semantics
    preserving: zero rows/cols contribute 0 and ReLU(0)=0) and slices the result."""
    w1, b1, w2, b2, w3, b3 = params
    B, d_in = x.shape
    h = w1.shape[1]

    # TB = 8 sublane-rows * 128 lanes of outputs per grid step -> fully (8,128)-aligned
    # x tile and out tile, within the 512-2048 row sweet spot.
    assert tb % 1024 == 0, "tb must be a multiple of 1024 (8 sublanes x 128 lanes)"

    d_pad = _round_up(d_in, 128)
    h_pad = _round_up(h, 128)
    b_pad = _round_up(B, tb)
    num_tiles = b_pad // tb

    # bf16 matmul operands (halves weight VMEM/DMA, full-rate MXU); biases & final row
    # stay f32 for the VPU path.
    xp = jnp.pad(x.astype(jnp.bfloat16), ((0, b_pad - B), (0, d_pad - d_in)))
    w1p = jnp.pad(w1.astype(jnp.bfloat16), ((0, d_pad - d_in), (0, h_pad - h)))
    b1p = jnp.pad(b1.reshape(1, -1).astype(jnp.float32), ((0, 0), (0, h_pad - h)))
    w2p = jnp.pad(w2.astype(jnp.bfloat16), ((0, h_pad - h), (0, h_pad - h)))
    b2p = jnp.pad(b2.reshape(1, -1).astype(jnp.float32), ((0, 0), (0, h_pad - h)))
    w3p = jnp.pad(w3.reshape(1, -1).astype(jnp.float32), ((0, 0), (0, h_pad - h)))
    b3p = b3.reshape(1, 1).astype(jnp.float32)

    grid_spec = pltpu.PrefetchScalarGridSpec(
        num_scalar_prefetch=0,
        grid=(num_tiles,),
        in_specs=[
            pl.BlockSpec((tb, d_pad), lambda i: (i, 0)),      # streamed x tile
            pl.BlockSpec((d_pad, h_pad), lambda i: (0, 0)),   # resident weights/biases
            pl.BlockSpec((1, h_pad), lambda i: (0, 0)),
            pl.BlockSpec((h_pad, h_pad), lambda i: (0, 0)),
            pl.BlockSpec((1, h_pad), lambda i: (0, 0)),
            pl.BlockSpec((1, h_pad), lambda i: (0, 0)),
            pl.BlockSpec((1, 1), lambda i: (0, 0)),
        ],
        out_specs=pl.BlockSpec((tb // 128, 128), lambda i: (i, 0)),  # lane-dense out
    )

    out = pl.pallas_call(
        mlp_regression_kernel,
        out_shape=jax.ShapeDtypeStruct((b_pad // 128, 128), jnp.float32),
        grid_spec=grid_spec,
        compiler_params=pltpu.CompilerParams(
            # batch tiles are independent -> megacore-shardable on v7x (2 TCs)
            dimension_semantics=("parallel",),
            # explicit, sized to fit v7x (64 MiB physical / 32 MiB default scoped).
            # NOTE: if HIDDEN is scaled to ~4096+, resident bf16 w2 alone approaches
            # this budget — tile the hidden dim of layer 2 in that regime.
            vmem_limit_bytes=32 * 1024 * 1024,
        ),
    )(xp, w1p, b1p, w2p, b2p, w3p, b3p)

    # lane-dense (b_pad//128, 128) -> (B, 1); row-major flatten matches batch order.
    return out.reshape(b_pad, 1)[:B]


def init_params(key, d_in, hidden):
    """Deterministic parameter init (Kaiming-ish scaling), all float32."""
    k1, k2, k3 = jax.random.split(key, 3)
    w1 = jax.random.normal(k1, (d_in, hidden), jnp.float32) * (2.0 / d_in) ** 0.5
    b1 = jnp.zeros((1, hidden), jnp.float32)
    w2 = jax.random.normal(k2, (hidden, hidden), jnp.float32) * (2.0 / hidden) ** 0.5
    b2 = jnp.zeros((1, hidden), jnp.float32)
    w3 = jax.random.normal(k3, (hidden, 1), jnp.float32) * (2.0 / hidden) ** 0.5
    b3 = jnp.zeros((1, 1), jnp.float32)
    return (w1, b1, w2, b2, w3, b3)


def reference_forward(x, params):
    """Pure-JAX reference, mirroring the kernel's bf16 matmul-operand rounding
    (f32 accumulation), so the comparison tolerance can stay tight."""
    w1, b1, w2, b2, w3, b3 = params
    r = lambda a: a.astype(jnp.bfloat16).astype(jnp.float32)
    h1 = jnp.maximum(r(x) @ r(w1) + b1, 0.0)
    h2 = jnp.maximum(r(h1) @ r(w2) + b2, 0.0)
    return h2 @ w3 + b3


if __name__ == "__main__":
    key = jax.random.PRNGKey(0)
    kx, kp = jax.random.split(key)

    # Small demo sizes; B chosen non-divisible by the tile and >1 tile after padding so
    # the batch grid, tail padding and resident-weight path are all exercised.
    B, D_IN, HIDDEN = 2000, 16, 32
    x = jax.random.normal(kx, (B, D_IN), jnp.float32)
    params = init_params(kp, D_IN, HIDDEN)

    y = deep_regression_forward(x, params)
    jax.block_until_ready(y)

    y_ref = reference_forward(x, params)
    assert y.shape == (B, 1)
    assert jnp.allclose(y, y_ref, atol=1e-3, rtol=1e-3), float(jnp.max(jnp.abs(y - y_ref)))

    print("KERNEL_OK")
</pallas_src>

<mosaic_0001>
module attributes {stable_mosaic.version = 11 : i64} {
  func.func @mlp_regression_kernel(%arg0: i32, %arg1: memref<1024x128xbf16, #tpu.memory_space<vmem>>, %arg2: memref<128x128xbf16, #tpu.memory_space<vmem>>, %arg3: memref<1x128xf32, #tpu.memory_space<vmem>>, %arg4: memref<128x128xbf16, #tpu.memory_space<vmem>>, %arg5: memref<1x128xf32, #tpu.memory_space<vmem>>, %arg6: memref<1x128xf32, #tpu.memory_space<vmem>>, %arg7: memref<1x1xf32, #tpu.memory_space<vmem>>, %arg8: memref<8x128xf32, #tpu.memory_space<vmem>>) attributes {dimension_semantics = [#tpu.dimension_semantics<parallel>], iteration_bounds = array<i64: 2>, scalar_prefetch = 0 : i64, scratch_operands = 0 : i64, tpu.core_type = #tpu.core_type<tc>, window_params = [{transform_indices = @transform_0, window_bounds = array<i64: 1024, 128>}, {pipeline_mode = #tpu.pipeline_mode<synchronous>, transform_indices = @transform_1, window_bounds = array<i64: 128, 128>}, {pipeline_mode = #tpu.pipeline_mode<synchronous>, transform_indices = @transform_2, window_bounds = array<i64: 1, 128>}, {pipeline_mode = #tpu.pipeline_mode<synchronous>, transform_indices = @transform_3, window_bounds = array<i64: 128, 128>}, {pipeline_mode = #tpu.pipeline_mode<synchronous>, transform_indices = @transform_4, window_bounds = array<i64: 1, 128>}, {pipeline_mode = #tpu.pipeline_mode<synchronous>, transform_indices = @transform_5, window_bounds = array<i64: 1, 128>}, {pipeline_mode = #tpu.pipeline_mode<synchronous>, transform_indices = @transform_6, window_bounds = array<i64: 1, 1>}, {transform_indices = @transform_7, window_bounds = array<i64: 8, 128>}]} {
    %c0 = arith.constant 0 : index
    %c0_0 = arith.constant 0 : index
    %0 = vector.load %arg1[%c0, %c0_0] : memref<1024x128xbf16, #tpu.memory_space<vmem>>, vector<1024x128xbf16>
    %c0_1 = arith.constant 0 : index
    %c0_2 = arith.constant 0 : index
    %1 = vector.load %arg3[%c0_1, %c0_2] : memref<1x128xf32, #tpu.memory_space<vmem>>, vector<1x128xf32>
    %c0_3 = arith.constant 0 : index
    %c0_4 = arith.constant 0 : index
    %2 = vector.load %arg5[%c0_3, %c0_4] : memref<1x128xf32, #tpu.memory_space<vmem>>, vector<1x128xf32>
    %c0_5 = arith.constant 0 : index
    %c0_6 = arith.constant 0 : index
    %3 = vector.load %arg6[%c0_5, %c0_6] : memref<1x128xf32, #tpu.memory_space<vmem>>, vector<1x128xf32>
    %c0_7 = arith.constant 0 : index
    %c0_8 = arith.constant 0 : index
    %4 = vector.load %arg7[%c0_7, %c0_8] : memref<1x1xf32, #tpu.memory_space<vmem>>, vector<1x1xf32>
    %c0_9 = arith.constant 0 : index
    %c0_10 = arith.constant 0 : index
    %5 = vector.load %arg2[%c0_9, %c0_10] : memref<128x128xbf16, #tpu.memory_space<vmem>>, vector<128x128xbf16>
    %cst = arith.constant dense<0.000000e+00> : vector<1024x128xf32>
    %6 = tpu.matmul %0, %5, %cst {dimension_numbers = #tpu.dot_dimension_numbers<[1], [0], [0], [1], [0, 0, 1, 1], [], []>} : vector<1024x128xbf16>, vector<128x128xbf16>, vector<1024x128xf32> -> vector<1024x128xf32>
    %7 = vector.broadcast %1 : vector<1x128xf32> to vector<1024x128xf32>
    %8 = arith.addf %6, %7 : vector<1024x128xf32>
    %cst_11 = arith.constant 0.000000e+00 : f32
    %9 = vector.broadcast %cst_11 : f32 to vector<1024x128xf32>
    %10 = arith.maximumf %8, %9 : vector<1024x128xf32>
    %11 = arith.truncf %10 : vector<1024x128xf32> to vector<1024x128xbf16>
    %c0_12 = arith.constant 0 : index
    %c0_13 = arith.constant 0 : index
    %12 = vector.load %arg4[%c0_12, %c0_13] : memref<128x128xbf16, #tpu.memory_space<vmem>>, vector<128x128xbf16>
    %cst_14 = arith.constant dense<0.000000e+00> : vector<1024x128xf32>
    %13 = tpu.matmul %11, %12, %cst_14 {dimension_numbers = #tpu.dot_dimension_numbers<[1], [0], [0], [1], [0, 0, 1, 1], [], []>} : vector<1024x128xbf16>, vector<128x128xbf16>, vector<1024x128xf32> -> vector<1024x128xf32>
    %14 = vector.broadcast %2 : vector<1x128xf32> to vector<1024x128xf32>
    %15 = arith.addf %13, %14 : vector<1024x128xf32>
    %cst_15 = arith.constant 0.000000e+00 : f32
    %16 = vector.broadcast %cst_15 : f32 to vector<1024x128xf32>
    %17 = arith.maximumf %15, %16 : vector<1024x128xf32>
    %18 = vector.broadcast %3 : vector<1x128xf32> to vector<1024x128xf32>
    %19 = arith.mulf %17, %18 : vector<1024x128xf32>
    %20 = vector.shape_cast %19 : vector<1024x128xf32> to vector<8x128x128xf32>
    %cst_16 = arith.constant dense<0.000000e+00> : vector<8x128xf32>
    %21 = vector.multi_reduction <add>, %20, %cst_16 [2] : vector<8x128x128xf32> to vector<8x128xf32>
    %22 = vector.broadcast %4 : vector<1x1xf32> to vector<8x128xf32>
    %23 = arith.addf %21, %22 : vector<8x128xf32>
    %c0_17 = arith.constant 0 : index
    %c0_18 = arith.constant 0 : index
    %24 = vector.load %arg8[%c0_17, %c0_18] : memref<8x128xf32, #tpu.memory_space<vmem>>, vector<8x128xf32>
    tpu.vector_store %arg8[%c0_17, %c0_18], %23 {strides = array<i32>} : memref<8x128xf32, #tpu.memory_space<vmem>>, vector<8x128xf32>,
    return
  }
  func.func @transform_0(%arg0: i32) -> (i32, i32) {
    %c0_i32 = arith.constant 0 : i32
    %c0_i32_0 = arith.constant 0 : i32
    return %arg0, %c0_i32 : i32, i32
  }
  func.func @transform_1(%arg0: i32) -> (i32, i32) {
    %c0_i32 = arith.constant 0 : i32
    %c0_i32_0 = arith.constant 0 : i32
    %c0_i32_1 = arith.constant 0 : i32
    return %c0_i32, %c0_i32_0 : i32, i32
  }
  func.func @transform_2(%arg0: i32) -> (i32, i32) {
    %c0_i32 = arith.constant 0 : i32
    %c0_i32_0 = arith.constant 0 : i32
    %c0_i32_1 = arith.constant 0 : i32
    return %c0_i32, %c0_i32_0 : i32, i32
  }
  func.func @transform_3(%arg0: i32) -> (i32, i32) {
    %c0_i32 = arith.constant 0 : i32
    %c0_i32_0 = arith.constant 0 : i32
    %c0_i32_1 = arith.constant 0 : i32
    return %c0_i32, %c0_i32_0 : i32, i32
  }
  func.func @transform_4(%arg0: i32) -> (i32, i32) {
    %c0_i32 = arith.constant 0 : i32
    %c0_i32_0 = arith.constant 0 : i32
    %c0_i32_1 = arith.constant 0 : i32
    return %c0_i32, %c0_i32_0 : i32, i32
  }
  func.func @transform_5(%arg0: i32) -> (i32, i32) {
    %c0_i32 = arith.constant 0 : i32
    %c0_i32_0 = arith.constant 0 : i32
    %c0_i32_1 = arith.constant 0 : i32
    return %c0_i32, %c0_i32_0 : i32, i32
  }
  func.func @transform_6(%arg0: i32) -> (i32, i32) {
    %c0_i32 = arith.constant 0 : i32
    %c0_i32_0 = arith.constant 0 : i32
    %c0_i32_1 = arith.constant 0 : i32
    return %c0_i32, %c0_i32_0 : i32, i32
  }
  func.func @transform_7(%arg0: i32) -> (i32, i32) {
    %c0_i32 = arith.constant 0 : i32
    %c0_i32_0 = arith.constant 0 : i32
    return %arg0, %c0_i32 : i32, i32
  }
}

</mosaic_0001>

<bundles_post_ra>
// kernel: deep_regression_forward.1
= control target key start
LH: loop header
LB: loop body
LE: loop exit
PB: predicated region body
PF: predicated region fallthrough
CT: control target
= control target key end

     0   :  { %s5644_s0 = inlined_call_operand.vmem [shape: bf16[2048,128], index: 0, kind: input, shape index: {}]   ;;  %s5645_s1 = inlined_call_operand.vmem [shape: bf16[128,128], index: 1, kind: input, shape index: {}]   ;;  %s5646_s2 = inlined_call_operand.vmem [shape: f32[1,128], index: 2, kind: input, shape index: {}]   ;;  %s5647_s3 = inlined_call_operand.vmem [shape: bf16[128,128], index: 3, kind: input, shape index: {}]   ;;  %s5648_s4 = inlined_call_operand.vmem [shape: f32[1,128], index: 4, kind: input, shape index: {}]   ;;  %s5649_s5 = inlined_call_operand.vmem [shape: f32[1,128], index: 5, kind: input, shape index: {}]   ;;  %s5650_s6 = inlined_call_operand.<no memory space> [shape: f32[1,1], index: 6, kind: input, shape index: {}]   ;;  %s5651_s7 = inlined_call_operand.hbm [shape: f32[16,128], index: 7, kind: output, shape index: {}]  }
   0x1   :  { %v12_v0 = vstv %s5650_s6 }
   0x2   :  { %13 = vst [vmem:[#allocation2] sm:$0x1] %v12_v0 }
   0x3   :  { %14 = vsyncpa [#allocation4], 0 }
   0x4   :  { %16 = vsyncpa [#allocation4 + $0x1], 0  ;;  %s4516_s26 = smov 0   ;;  %s4518_s27 = smov 0  }
   0x5   :  { %s4520_s28 = smov 0   ;;  %s4522_s29 = smov 0  }
   0x6 LB: > { %s3755_s6 = sadd.s32 4294967295, %s4469_s29   ;;  %s3756_s30 = sadd.s32 4294967294, %s4469_s29   ;;  %s4469_s29 = sphi %s4522_s29, %s5657_s29   ;;  %s4465_s28 = sphi %s4520_s28, %s5656_s28   ;;  %s4461_s27 = sphi %s4518_s27, %s5655_s27   ;;  %s4457_s26 = sphi %s4516_s26, %s5654_s26  }
   0x7   : > { %s4539_s8 = sadd.s32 1, %s4469_s29   ;;  %s181_s9 = sadd.s32 1, %s4465_s28 }
   0x8   : > { %s178_s10 = ssub.s32 %s4469_s29, %s4539_s8  ;;  %p191_p0 = scmp.ne.s32.totalorder %s4465_s28, %s4461_s27 }
   0x9   : > { %p179_p1 = scmp.eq.s32.totalorder %s178_s10, 0  ;;  %p192_p2 = scmp.eq.s32.totalorder %s3755_s6, 1 }
   0xa   : > { %p197_p3 = scmp.ne.s32.totalorder %s4461_s27, %s4457_s26  ;;  %p198_p4 = scmp.eq.s32.totalorder %s3756_s30, 1 }
   0xb   : > { %s4549_s11 = scalar_select %p179_p1, %s4465_s28, %s181_s9  }
   0xc   : > { %p4551_p5 = por %p192_p2, %p191_p0  ;;  %p4555_p6 = por %p198_p4, %p197_p3 }
   0xd   : > { %p3759_p7 = scmp.ge.s32.totalorder %s4469_s29, 1  ;;  %p243_p8 = scmp.lt.s32.totalorder %s4469_s29, 3 }
   0xf   : > { %p244_p9 = pnand %p3759_p7, %p243_p8 }
  0x10   : > { %s4564_s16 = sshll.u32 (!%p244_p9), %s3755_s6, 7  ;;  %s272_s24 = sand.u32 (!%p244_p9), 1, %s4461_s27  }
  0x11   : > { %247 = sbr.rel (%p244_p9) target bundleno = 910 (0x38e), region = 48  ;;  %p276_p10 = scmp.lt.s32.totalorder (!%p244_p9), %s4564_s16, 255 }
  0x12   : > { %s5606_s14 = scalar_lea.hbm (!%p244_p9), %s5651_s7, %s4564_s16  ;;  %s3684_s15 = scalar_lea.sflag (!%p244_p9), [#allocation4], %s272_s24 }
  0x13   : > { %s4472_s18 = smov (!%p244_p9), [#allocation3]  }
  0x16   : > { %v4324_v1 = vld [vmem:[%s5645_s1 + $0x38] sm:$0xff]   ;;  %v4325_v2 = vld [vmem:[%s5645_s1 + $0x30] sm:$0xff]   ;;  %s277_s19 = scalar_select %p276_p10, %s4564_s16, 255  ;;  %v4326_v3 = vld [vmem:[%s5645_s1 + $0x28] sm:$0xff]   ;;  %vm3014_vm0 = vcmask 130112   ;;  %vm3021_vm1 = vcmask 195712  }
  0x17   : > { %3995 = vmatprep.subr.bf16.mxu0 %v4324_v1  ;;  %v4327_v4 = vld [vmem:[%s5645_s1 + $0x20] sm:$0xff]   ;;  %v4328_v6 = vld [vmem:[%s5645_s1 + $0x18] sm:$0xff]   ;;  %v4329_v7 = vld [vmem:[%s5645_s1 + $0x10] sm:$0xff]   ;;  %vm3028_vm2 = vcmask 261312   ;;  %vm3035_vm3 = vcmask 326912   ;;  %vm3042_vm4 = vcmask 392512  }
  0x18   : > { %3996 = vmatpush3.bf16.msra.mxu0 %v4324_v1  ;;  %s3762_s22 = sshll.u32 %s277_s19, 2  ;;  %v4330_v8 = vld [vmem:[%s5645_s1 + $0x8] sm:$0xff]   ;;  %v4331_v9 = vld [vmem:[%s5645_s1] sm:$0xff]   ;;  %v4376_v22 = vld [vmem:[%s5647_s3 + $0x38] sm:$0xff]   ;;  %vm3049_vm5 = vcmask 458112   ;;  %vm3056_vm6 = vcmask 523712  }
  0x19   : > { %3997 = vmatprep.subr.bf16.mxu0 %v4325_v2  ;;  %s4577_s25 = scalar_lea.vmem %s5644_s0, %s3762_s22  ;;  %4139 = vmatprep.subr.bf16.mxu1 %v4376_v22  ;;  %v4379_v25 = vld [vmem:[%s5647_s3 + $0x30] sm:$0xff]   ;;  %v4380_v26 = vld [vmem:[%s5647_s3 + $0x28] sm:$0xff]   ;;  %v4383_v29 = vld [vmem:[%s5647_s3 + $0x20] sm:$0xff]   ;;  %vm3063_vm7 = vcmask 589312   ;;  %vm3070_vm8 = vcmask 654912   ;;  %vm3077_vm9 = vcmask 720512  }
  0x1a   : > { %v4332_v5 = vld [vmem:[%s4577_s25] sm:$0xff]   ;;  %v4333_v10 = vld [vmem:[%s4577_s25 + $0x8] sm:$0xff]   ;;  %v4334_v11 = vld [vmem:[%s4577_s25 + $0x10] sm:$0xff]   ;;  %4140 = vmatpush3.bf16.msra.mxu1 %v4376_v22  ;;  %vm3084_vm10 = vcmask 786112   ;;  %vm3091_vm11 = vcmask 851712   ;;  %vm3098_vm12 = vcmask 917312  }
  0x1b   : > { %4011 = vmatprep.mubr.bf16.mxu0 %v4332_v5  ;;  %v4335_v12 = vld [vmem:[%s4577_s25 + $0x18] sm:$0xff]   ;;  %v4336_v13 = vld [vmem:[%s4577_s25 + $0x20] sm:$0xff]   ;;  %v4337_v14 = vld [vmem:[%s4577_s25 + $0x28] sm:$0xff]   ;;  %4141 = vmatprep.subr.bf16.mxu1 %v4379_v25  ;;  %vm3105_vm13 = vcmask 982912   ;;  %vm3112_vm14 = vcmask 1048512   ;;  %vm3667_vm15 = vcmask 1041409  }
  0x1c   : > { %3998 = vmatpush3.bf16.msra.mxu0 %v4325_v2  ;;  %v4338_v15 = vld [vmem:[%s4577_s25 + $0x30] sm:$0xff]   ;;  %v4339_v16 = vld [vmem:[%s4577_s25 + $0x38] sm:$0xff]   ;;  %v4340_v17 = vld [vmem:[%s4577_s25 + $0x40] sm:$0xff]   ;;  %s4413_s19 = sshll.u32 %s4472_s18, 4  ;;  %s4414_s19 = int_to_ptr.vmem [resolvable:$false] %s4413_s19 }
  0x1d   : > { %3999 = vmatprep.subr.bf16.mxu0 %v4326_v3  ;;  %v4341_v18 = vld [vmem:[%s4577_s25 + $0x48] sm:$0xff]   ;;  %v4342_v19 = vld [vmem:[%s4577_s25 + $0x50] sm:$0xff]   ;;  %v4343_v20 = vld [vmem:[%s4577_s25 + $0x58] sm:$0xff]   ;;  %s4415_s20 = scalar_lea.vmem %s4414_s19, 256 }
  0x1e   : > { %v4344_v21 = vld [vmem:[%s4577_s25 + $0x60] sm:$0xff]   ;;  %v4345_v23 = vld [vmem:[%s4577_s25 + $0x68] sm:$0xff]   ;;  %v4346_v24 = vld [vmem:[%s4577_s25 + $0x70] sm:$0xff]   ;;  %4142 = vmatpush3.bf16.msra.mxu1 %v4379_v25 }
  0x1f   : > { %v4347_v27 = vld [vmem:[%s4577_s25 + $0x78] sm:$0xff]   ;;  %4143 = vmatprep.subr.bf16.mxu1 %v4380_v26  ;;  %v4348_v28 = vld [vmem:[%s4577_s25 + $0x80] sm:$0xff]   ;;  %v4349_v31 = vld [vmem:[%s4577_s25 + $0x88] sm:$0xff]  }
  0x20   : > { %4000 = vmatpush3.bf16.msra.mxu0 %v4326_v3  ;;  %v4384_v30 = vld [vmem:[%s5647_s3 + $0x18] sm:$0xff]   ;;  %v4350_v32 = vld [vmem:[%s4577_s25 + $0x90] sm:$0xff]   ;;  %v4388_v35 = vld [vmem:[%s5647_s3 + $0x8] sm:$0xff]  }
  0x21   : > { %4001 = vmatprep.subr.bf16.mxu0 %v4327_v4  ;;  %v4387_v33 = vld [vmem:[%s5647_s3 + $0x10] sm:$0xff]   ;;  %v4351_v34 = vld [vmem:[%s4577_s25 + $0x98] sm:$0xff]   ;;  %v4352_v36 = vld [vmem:[%s4577_s25 + $0xa0] sm:$0xff]  }
  0x22   : > { %4144 = vmatpush3.bf16.msra.mxu1 %v4380_v26  ;;  %v4391_v37 = vld [vmem:[%s5647_s3] sm:$0xff]   ;;  %v4353_v38 = vld [vmem:[%s4577_s25 + $0xa8] sm:$0xff]   ;;  %v4354_v39 = vld [vmem:[%s4577_s25 + $0xb0] sm:$0xff]  }
  0x23   : > { %4145 = vmatprep.subr.bf16.mxu1 %v4383_v29  ;;  %v4355_v40 = vld [vmem:[%s4577_s25 + $0xb8] sm:$0xff]   ;;  %v4356_v41 = vld [vmem:[%s4577_s25 + $0xc0] sm:$0xff]   ;;  %v4357_v42 = vld [vmem:[%s4577_s25 + $0xc8] sm:$0xff]  }
  0x24   : > { %4002 = vmatpush3.bf16.msra.mxu0 %v4327_v4  ;;  %v4358_v43 = vld [vmem:[%s4577_s25 + $0xd0] sm:$0xff]   ;;  %v4359_v44 = vld [vmem:[%s4577_s25 + $0xd8] sm:$0xff]   ;;  %v4360_v45 = vld [vmem:[%s4577_s25 + $0xe0] sm:$0xff]  }
  0x25   : > { %4003 = vmatprep.subr.bf16.mxu0 %v4328_v6  ;;  %v4361_v46 = vld [vmem:[%s4577_s25 + $0xe8] sm:$0xff]   ;;  %v4362_v47 = vld [vmem:[%s4577_s25 + $0xf0] sm:$0xff]   ;;  %v4363_v48 = vld [vmem:[%s4577_s25 + $0xf8] sm:$0xff]  }
  0x26   : > { %4146 = vmatpush3.bf16.msra.mxu1 %v4383_v29  ;;  %v4364_v49 = vld [vmem:[%s4577_s25 + $0x100] sm:$0xff]   ;;  %v4365_v50 = vld [vmem:[%s4577_s25 + $0x108] sm:$0xff]   ;;  %v4366_v51 = vld [vmem:[%s4577_s25 + $0x110] sm:$0xff]  }
  0x27   : > { %4147 = vmatprep.subr.bf16.mxu1 %v4384_v30  ;;  %v4367_v52 = vld [vmem:[%s4577_s25 + $0x118] sm:$0xff]   ;;  %v4368_v53 = vld [vmem:[%s4577_s25 + $0x120] sm:$0xff]   ;;  %v4369_v54 = vld [vmem:[%s4577_s25 + $0x128] sm:$0xff]  }
  0x28   : > { %4004 = vmatpush3.bf16.msra.mxu0 %v4328_v6  ;;  %v4370_v55 = vld [vmem:[%s4577_s25 + $0x130] sm:$0xff]   ;;  %v4371_v56 = vld [vmem:[%s4577_s25 + $0x138] sm:$0xff]   ;;  %v4372_v57 = vld [vmem:[%s4577_s25 + $0x140] sm:$0xff]  }
  0x29   : > { %4005 = vmatprep.subr.bf16.mxu0 %v4329_v7  ;;  %v4373_v58 = vld [vmem:[%s4577_s25 + $0x148] sm:$0xff]   ;;  %v4374_v59 = vld [vmem:[%s4577_s25 + $0x150] sm:$0xff]   ;;  %v4375_v60 = vld [vmem:[%s4577_s25 + $0x158] sm:$0xff]  }
  0x2a   : > { %4148 = vmatpush3.bf16.msra.mxu1 %v4384_v30  ;;  %v4377_v61 = vld [vmem:[%s4577_s25 + $0x160] sm:$0xff]   ;;  %v4378_v62 = vld [vmem:[%s4577_s25 + $0x168] sm:$0xff]   ;;  %v4381_v63 = vld [vmem:[%s4577_s25 + $0x170] sm:$0xff]  }
  0x2b   : > { %4149 = vmatprep.subr.bf16.mxu1 %v4387_v33  ;;  %v4382_v0 = vld [vmem:[%s4577_s25 + $0x178] sm:$0xff]   ;;  %v4385_v1 = vld [vmem:[%s4577_s25 + $0x180] sm:$0xff]   ;;  %v4386_v2 = vld [vmem:[%s4577_s25 + $0x188] sm:$0xff]  }
  0x2c   : > { %4006 = vmatpush3.bf16.msra.mxu0 %v4329_v7  ;;  %v4389_v3 = vld [vmem:[%s4577_s25 + $0x190] sm:$0xff]   ;;  %v4672_v6 = vld [vmem:[%s5646_s2] ss:$0 sm:$0xff] }
  0x2d   : > { %4007 = vmatprep.subr.bf16.mxu0 %v4330_v8 }
  0x2e   : > { %4150 = vmatpush3.bf16.msra.mxu1 %v4387_v33 }
  0x2f   : > { %4151 = vmatprep.subr.bf16.mxu1 %v4388_v35 }
  0x30   : > { %4008 = vmatpush3.bf16.msra.mxu0 %v4330_v8  ;;  %v4390_v8 = vld [vmem:[%s4577_s25 + $0x198] sm:$0xff]  }
  0x31   : > { %4009 = vmatprep.subr.bf16.mxu0 %v4331_v9 }
  0x32   : > { %4152 = vmatpush3.bf16.msra.mxu1 %v4388_v35 }
  0x33   : > { %4153 = vmatprep.subr.bf16.mxu1 %v4391_v37 }
  0x34   : > { %4010 = vmatpush3.bf16.msra.mxu0 %v4331_v9 }
  0x36   : > { %4154 = vmatpush3.bf16.msra.mxu1 %v4391_v37 }
  0x37   : > { %4012 = vmatmul.mubr.bf16.vlgmr.msra.gmra.mxu0 %v4333_v10 }
  0x38   : > { %4015 = vmatprep.mubr.bf16.mxu0 %v4334_v11  ;;  %v4392_v11 = vld [vmem:[%s4577_s25 + $0x1a0] sm:$0xff]  }
  0x3f   : > { %4016 = vmatmul.mubr.bf16.gmra.mxu0 %v4335_v12 }
  0x40   : > { %4019 = vmatprep.mubr.bf16.mxu0 %v4336_v13 }
  0x47   : > { %4020 = vmatmul.mubr.bf16.gmra.mxu0 %v4337_v14 }
  0x48   : > { %4023 = vmatprep.mubr.bf16.mxu0 %v4338_v15 }
  0x4f   : > { %4024 = vmatmul.mubr.bf16.gmra.mxu0 %v4339_v16 }
  0x50   : > { %4027 = vmatprep.mubr.bf16.mxu0 %v4340_v17 }
  0x57   : > { %4028 = vmatmul.mubr.bf16.gmra.mxu0 %v4341_v18 }
  0x58   : > { %4031 = vmatprep.mubr.bf16.mxu0 %v4342_v19 }
  0x5f   : > { %4032 = vmatmul.mubr.bf16.gmra.mxu0 %v4343_v20 }
  0x60   : > { %4035 = vmatprep.mubr.bf16.mxu0 %v4344_v21 }
  0x67   : > { %4036 = vmatmul.mubr.bf16.gmra.mxu0 %v4345_v23 }
  0x68   : > { %4039 = vmatprep.mubr.bf16.mxu0 %v4346_v24  ;;  %v4393_v24 = vld [vmem:[%s4577_s25 + $0x1a8] sm:$0xff]  }
  0x6f   : > { %4040 = vmatmul.mubr.bf16.gmra.mxu0 %v4347_v27  ;;  %v4394_v27 = vld [vmem:[%s4577_s25 + $0x1b0] sm:$0xff]  }
  0x70   : > { %4043 = vmatprep.mubr.bf16.mxu0 %v4348_v28 }
  0x77   : > { %4044 = vmatmul.mubr.bf16.gmra.mxu0 %v4349_v31 }
  0x78   : > { %4047 = vmatprep.mubr.bf16.mxu0 %v4350_v32 }
  0x7f   : > { %4048 = vmatmul.mubr.bf16.gmra.mxu0 %v4351_v34 }
  0x80   : > { %4051 = vmatprep.mubr.bf16.mxu0 %v4352_v36 }
  0x87   : > { %4052 = vmatmul.mubr.bf16.gmra.mxu0 %v4353_v38 }
  0x88   : > { %4055 = vmatprep.mubr.bf16.mxu0 %v4354_v39 }
  0x8f   : > { %4056 = vmatmul.mubr.bf16.gmra.mxu0 %v4355_v40  ;;  %v4395_v40 = vld [vmem:[%s4577_s25 + $0x1b8] sm:$0xff]  }
  0x90   : > { %4059 = vmatprep.mubr.bf16.mxu0 %v4356_v41 }
  0x97   : > { %4060 = vmatmul.mubr.bf16.gmra.mxu0 %v4357_v42 }
  0x98   : > { %4063 = vmatprep.mubr.bf16.mxu0 %v4358_v43  ;;  %v4396_v43 = vld [vmem:[%s4577_s25 + $0x1c0] sm:$0xff]  }
  0x9f   : > { %4064 = vmatmul.mubr.bf16.gmra.mxu0 %v4359_v44 }
  0xa0   : > { %4067 = vmatprep.mubr.bf16.mxu0 %v4360_v45 }
  0xa7   : > { %4068 = vmatmul.mubr.bf16.gmra.mxu0 %v4361_v46 }
  0xa8   : > { %4071 = vmatprep.mubr.bf16.mxu0 %v4362_v47 }
  0xaf   : > { %4072 = vmatmul.mubr.bf16.gmra.mxu0 %v4363_v48 }
  0xb0   : > { %4075 = vmatprep.mubr.bf16.mxu0 %v4364_v49 }
  0xb7   : > { %4076 = vmatmul.mubr.bf16.gmra.mxu0 %v4365_v50 }
  0xb8   : > { %4079 = vmatprep.mubr.bf16.mxu0 %v4366_v51 }
  0xbf   : > { %4080 = vmatmul.mubr.bf16.gmra.mxu0 %v4367_v52 }
  0xc0   : > { %4083 = vmatprep.mubr.bf16.mxu0 %v4368_v53 }
  0xc7   : > { %4084 = vmatmul.mubr.bf16.gmra.mxu0 %v4369_v54 }
  0xc8   : > { %4087 = vmatprep.mubr.bf16.mxu0 %v4370_v55 }
  0xcf   : > { %4088 = vmatmul.mubr.bf16.gmra.mxu0 %v4371_v56  ;;  %v4397_v56 = vld [vmem:[%s4577_s25 + $0x1c8] sm:$0xff]  }
  0xd0   : > { %4091 = vmatprep.mubr.bf16.mxu0 %v4372_v57 }
  0xd7   : > { %4092 = vmatmul.mubr.bf16.gmra.mxu0 %v4373_v58 }
  0xd8   : > { %4095 = vmatprep.mubr.bf16.mxu0 %v4374_v59  ;;  %v4398_v59 = vld [vmem:[%s4577_s25 + $0x1d0] sm:$0xff]  }
  0xdf   : > { %4096 = vmatmul.mubr.bf16.gmra.mxu0 %v4375_v60 }
  0xe0   : > { %4099 = vmatprep.mubr.bf16.mxu0 %v4377_v61 }
  0xe7   : > { %4100 = vmatmul.mubr.bf16.gmra.mxu0 %v4378_v62 }
  0xe8   : > { %4103 = vmatprep.mubr.bf16.mxu0 %v4381_v63 }
  0xef   : > { %4104 = vmatmul.mubr.bf16.gmra.mxu0 %v4382_v0 }
  0xf0   : > { %4107 = vmatprep.mubr.bf16.mxu0 %v4385_v1 }
  0xf7   : > { %v4013_v4 = vpop.f32.mrf.mxu0  ;;  %4108 = vmatmul.mubr.bf16.gmra.mxu0 %v4386_v2 }
  0xf8   : > { %4111 = vmatprep.mubr.bf16.mxu0 %v4389_v3  ;;  %v911_v12 = vadd.f32 %v4013_v4, %v4672_v6 }
  0xf9   : > { %v902_v5 = vpop.f32.mrf.mxu0 }
  0xfa   : > { %v903_v9 = vadd.f32 %v4672_v6, %v902_v5  ;;  %v1415_v19 = vmax.f32 %v911_v12, 0.0  ;;  %v4400_v12 = vld [vmem:[%s4577_s25 + $0x1e0] sm:$0xff]  }
  0xfb   : > { %v4014_v7 = vpop.f32.mrf.mxu0 }
  0xfc   : > { %v914_v10 = vadd.f32 %v4014_v7, %v4672_v6  ;;  %v1413_v17 = vmax.f32 %v903_v9, 0.0  ;;  %v4399_v9 = vld [vmem:[%s4577_s25 + $0x1d8] sm:$0xff]  }
  0xfd   : > { %v905_v13 = vpop.f32.mrf.mxu0 }
  0xfe   : > { %v906_v14 = vadd.f32 %v4672_v6, %v905_v13  ;;  %v1416_v15 = vmax.f32 %v914_v10, 0.0 }
  0xff   : > { %v4017_v16 = vpop.f32.mrf.mxu0  ;;  %4112 = vmatmul.mubr.bf16.gmra.mxu0 %v4390_v8 }
 0x100   : > { %v1414_v18 = vmax.f32 %v906_v14, 0.0  ;;  %4115 = vmatprep.mubr.bf16.mxu0 %v4392_v11  ;;  %v1542_v22 = vpack.c.bf16 %v1416_v15, %v1415_v19  ;;  %v927_v28 = vadd.f32 %v4017_v16, %v4672_v6 }
 0x101   : > { %v918_v20 = vpop.f32.mrf.mxu0 }
 0x102   : > { %v1541_v21 = vpack.c.bf16 %v1414_v18, %v1413_v17  ;;  %v919_v25 = vadd.f32 %v4672_v6, %v918_v20  ;;  %v1419_v35 = vmax.f32 %v927_v28, 0.0  ;;  %v4402_v28 = vld [vmem:[%s4577_s25 + $0x1f0] sm:$0xff]  }
 0x103   : > { %v4018_v23 = vpop.f32.mrf.mxu0 }
 0x104   : > { %v930_v26 = vadd.f32 %v4018_v23, %v4672_v6  ;;  %4155 = vmatprep.mubr.bf16.mxu1 %v1541_v21  ;;  %v1417_v33 = vmax.f32 %v919_v25, 0.0  ;;  %v4401_v25 = vld [vmem:[%s4577_s25 + $0x1e8] sm:$0xff]  }
 0x105   : > { %v921_v29 = vpop.f32.mrf.mxu0  ;;  %4156 = vmatmul.mubr.bf16.vlgmr.msra.gmra.mxu1 %v1542_v22 }
 0x106   : > { %v922_v30 = vadd.f32 %v4672_v6, %v921_v29  ;;  %v1420_v31 = vmax.f32 %v930_v26, 0.0 }
 0x107   : > { %v4021_v32 = vpop.f32.mrf.mxu0  ;;  %4116 = vmatmul.mubr.bf16.gmra.mxu0 %v4393_v24 }
 0x108   : > { %v1418_v34 = vmax.f32 %v922_v30, 0.0  ;;  %4119 = vmatprep.mubr.bf16.mxu0 %v4394_v27  ;;  %v1544_v38 = vpack.c.bf16 %v1420_v31, %v1419_v35  ;;  %v943_v44 = vadd.f32 %v4021_v32, %v4672_v6 }
 0x109   : > { %v934_v36 = vpop.f32.mrf.mxu0 }
 0x10a   : > { %v1543_v37 = vpack.c.bf16 %v1418_v34, %v1417_v33  ;;  %v935_v41 = vadd.f32 %v4672_v6, %v934_v36  ;;  %v1423_v51 = vmax.f32 %v943_v44, 0.0 }
 0x10b   : > { %v4022_v39 = vpop.f32.mrf.mxu0 }
 0x10c   : > { %v946_v42 = vadd.f32 %v4022_v39, %v4672_v6  ;;  %4159 = vmatprep.mubr.bf16.mxu1 %v1543_v37  ;;  %v1421_v49 = vmax.f32 %v935_v41, 0.0  ;;  %v4403_v41 = vld [vmem:[%s4577_s25 + $0x1f8] sm:$0xff]   ;;  %s3760_s25 = sshll.u32 %s272_s24, 3 }
 0x10d   : > { %v937_v45 = vpop.f32.mrf.mxu0  ;;  %4160 = vmatmul.mubr.bf16.gmra.mxu1 %v1544_v38  ;;  %s274_s6 = scalar_lea.vmem [#allocation3], %s3760_s25 }
 0x10e   : > { %v938_v46 = vadd.f32 %v4672_v6, %v937_v45  ;;  %v1424_v47 = vmax.f32 %v946_v42, 0.0  ;;  %s3697_s30 = sshll.u32 %s274_s6, 4  ;;  %s3698_s30 = int_to_ptr.vmem [resolvable:$true] %s3697_s30 }
 0x10f   : > { %v4025_v48 = vpop.f32.mrf.mxu0  ;;  %4120 = vmatmul.mubr.bf16.gmra.mxu0 %v4395_v40  ;;  %s4409_s17 = scalar_lea.vmem %s3698_s30, 128  ;;  %p4416_p0 = scmp.lt.s32.totalorder %s3698_s30, %s4414_s19 }
 0x110   : > { %v1422_v50 = vmax.f32 %v938_v46, 0.0  ;;  %4123 = vmatprep.mubr.bf16.mxu0 %v4396_v43  ;;  %v1546_v54 = vpack.c.bf16 %v1424_v47, %v1423_v51  ;;  %v959_v60 = vadd.f32 %v4025_v48, %v4672_v6  ;;  %v4471_v47 = vmov 0   ;;  %v3846_v48 = vld [vmem:[#allocation2] ss:$0 sm:$0xff]  ;;  %p4410_p11 = scmp.ne.s32.totalorder %s3698_s30, %s4409_s17  ;;  %p4417_p1 = scmp.lt.s32.totalorder %s4415_s20, %s4409_s17 }
 0x111   : > { %v950_v52 = vpop.f32.mrf.mxu0  ;;  %4323 = vset.pattern.permute.xlu0 %v4471_v47 }
 0x112   : > { %v1545_v53 = vpack.c.bf16 %v1422_v50, %v1421_v49  ;;  %v951_v57 = vadd.f32 %v4672_v6, %v950_v52  ;;  %v1427_v3 = vmax.f32 %v959_v60, 0.0  ;;  %2744 = vperm.xlu0 %4323, %v3846_v48   ;;  %p4411_p12 = pnand %p4410_p11, %p4551_p5  ;;  %p4418_p2 = por %p4417_p1, %p4416_p0 }
 0x113   : > { %v4026_v55 = vpop.f32.mrf.mxu0 }
 0x114   : > { %v962_v58 = vadd.f32 %v4026_v55, %v4672_v6  ;;  %4163 = vmatprep.mubr.bf16.mxu1 %v1545_v53  ;;  %v1425_v1 = vmax.f32 %v951_v57, 0.0  ;;  %p4412_p13 = pneg %p4411_p12 }
 0x115   : > { %v953_v61 = vpop.f32.mrf.mxu0  ;;  %4164 = vmatmul.mubr.bf16.gmra.mxu1 %v1546_v54 }
 0x116   : > { %v954_v62 = vadd.f32 %v4672_v6, %v953_v61  ;;  %v1428_v63 = vmax.f32 %v962_v58, 0.0  ;;  %p4419_p3 = pnand %p4418_p2, %p4412_p13 }
 0x117   : > { %v4029_v0 = vpop.f32.mrf.mxu0  ;;  %4124 = vmatmul.mubr.bf16.gmra.mxu0 %v4397_v56 }
 0x118   : > { %v1426_v2 = vmax.f32 %v954_v62, 0.0  ;;  %4127 = vmatprep.mubr.bf16.mxu0 %v4398_v59  ;;  %v1548_v7 = vpack.c.bf16 %v1428_v63, %v1427_v3  ;;  %v975_v13 = vadd.f32 %v4029_v0, %v4672_v6 }
 0x119   : > { %v966_v4 = vpop.f32.mrf.mxu0 }
 0x11a   : > { %v1547_v5 = vpack.c.bf16 %v1426_v2, %v1425_v1  ;;  %v967_v10 = vadd.f32 %v4672_v6, %v966_v4  ;;  %v1431_v20 = vmax.f32 %v975_v13, 0.0 }
 0x11b   : > { %v4030_v8 = vpop.f32.mrf.mxu0 }
 0x11c   : > { %v978_v11 = vadd.f32 %v4030_v8, %v4672_v6  ;;  %4167 = vmatprep.mubr.bf16.mxu1 %v1547_v5  ;;  %v1429_v18 = vmax.f32 %v967_v10, 0.0 }
 0x11d   : > { %v969_v14 = vpop.f32.mrf.mxu0  ;;  %4168 = vmatmul.mubr.bf16.gmra.mxu1 %v1548_v7 }
 0x11e   : > { %v970_v15 = vadd.f32 %v4672_v6, %v969_v14  ;;  %v1432_v16 = vmax.f32 %v978_v11, 0.0 }
 0x11f   : > { %v4033_v17 = vpop.f32.mrf.mxu0  ;;  %4128 = vmatmul.mubr.bf16.gmra.mxu0 %v4399_v9 }
 0x120   : > { %v1430_v19 = vmax.f32 %v970_v15, 0.0  ;;  %4131 = vmatprep.mubr.bf16.mxu0 %v4400_v12  ;;  %v1550_v23 = vpack.c.bf16 %v1432_v16, %v1431_v20  ;;  %v991_v29 = vadd.f32 %v4033_v17, %v4672_v6 }
 0x121   : > { %v982_v21 = vpop.f32.mrf.mxu0 }
 0x122   : > { %v1549_v22 = vpack.c.bf16 %v1430_v19, %v1429_v18  ;;  %v983_v26 = vadd.f32 %v4672_v6, %v982_v21  ;;  %v1435_v36 = vmax.f32 %v991_v29, 0.0 }
 0x123   : > { %v4034_v24 = vpop.f32.mrf.mxu0 }
 0x124   : > { %v994_v27 = vadd.f32 %v4034_v24, %v4672_v6  ;;  %4171 = vmatprep.mubr.bf16.mxu1 %v1549_v22  ;;  %v1433_v34 = vmax.f32 %v983_v26, 0.0 }
 0x125   : > { %v985_v30 = vpop.f32.mrf.mxu0  ;;  %4172 = vmatmul.mubr.bf16.gmra.mxu1 %v1550_v23 }
 0x126   : > { %v986_v31 = vadd.f32 %v4672_v6, %v985_v30  ;;  %v1436_v32 = vmax.f32 %v994_v27, 0.0 }
 0x127   : > { %v4037_v33 = vpop.f32.mrf.mxu0  ;;  %4132 = vmatmul.mubr.bf16.gmra.mxu0 %v4401_v25 }
 0x128   : > { %v1434_v35 = vmax.f32 %v986_v31, 0.0  ;;  %4135 = vmatprep.mubr.bf16.mxu0 %v4402_v28  ;;  %v1552_v39 = vpack.c.bf16 %v1436_v32, %v1435_v36  ;;  %v1007_v44 = vadd.f32 %v4037_v33, %v4672_v6 }
 0x129   : > { %v998_v37 = vpop.f32.mrf.mxu0 }
 0x12a   : > { %v1551_v38 = vpack.c.bf16 %v1434_v35, %v1433_v34  ;;  %v999_v42 = vadd.f32 %v4672_v6, %v998_v37  ;;  %v1439_v53 = vmax.f32 %v1007_v44, 0.0 }
 0x12b   : > { %v4038_v40 = vpop.f32.mrf.mxu0 }
 0x12c   : > { %v1010_v43 = vadd.f32 %v4038_v40, %v4672_v6  ;;  %4175 = vmatprep.mubr.bf16.mxu1 %v1551_v38  ;;  %v1437_v51 = vmax.f32 %v999_v42, 0.0 }
 0x12d   : > { %v1001_v45 = vpop.f32.mrf.mxu0  ;;  %4176 = vmatmul.mubr.bf16.gmra.mxu1 %v1552_v39 }
 0x12e   : > { %v1002_v46 = vadd.f32 %v4672_v6, %v1001_v45  ;;  %v1440_v49 = vmax.f32 %v1010_v43, 0.0 }
 0x12f   : > { %v4041_v50 = vpop.f32.mrf.mxu0  ;;  %4136 = vmatmul.mubr.bf16.gmra.mxu0 %v4403_v41 }
 0x130   : > { %v1438_v52 = vmax.f32 %v1002_v46, 0.0  ;;  %v1554_v56 = vpack.c.bf16 %v1440_v49, %v1439_v53  ;;  %v1023_v60 = vadd.f32 %v4041_v50, %v4672_v6 }
 0x131   : > { %v1014_v54 = vpop.f32.mrf.mxu0 }
 0x132   : > { %v1553_v55 = vpack.c.bf16 %v1438_v52, %v1437_v51  ;;  %v1015_v58 = vadd.f32 %v4672_v6, %v1014_v54  ;;  %v1443_v3 = vmax.f32 %v1023_v60, 0.0 }
 0x133   : > { %v4042_v57 = vpop.f32.mrf.mxu0 }
 0x134   : > { %v1026_v59 = vadd.f32 %v4042_v57, %v4672_v6  ;;  %4179 = vmatprep.mubr.bf16.mxu1 %v1553_v55  ;;  %v1441_v1 = vmax.f32 %v1015_v58, 0.0 }
 0x135   : > { %v1017_v61 = vpop.f32.mrf.mxu0  ;;  %4180 = vmatmul.mubr.bf16.gmra.mxu1 %v1554_v56 }
 0x136   : > { %v1018_v62 = vadd.f32 %v4672_v6, %v1017_v61  ;;  %v1444_v63 = vmax.f32 %v1026_v59, 0.0 }
 0x137   : > { %v4045_v0 = vpop.f32.mrf.mxu0 }
 0x138   : > { %v1442_v2 = vmax.f32 %v1018_v62, 0.0  ;;  %v1556_v7 = vpack.c.bf16 %v1444_v63, %v1443_v3  ;;  %v1039_v11 = vadd.f32 %v4045_v0, %v4672_v6 }
 0x139   : > { %v1030_v4 = vpop.f32.mrf.mxu0 }
 0x13a   : > { %v1555_v5 = vpack.c.bf16 %v1442_v2, %v1441_v1  ;;  %v1031_v9 = vadd.f32 %v4672_v6, %v1030_v4  ;;  %v1447_v18 = vmax.f32 %v1039_v11, 0.0 }
 0x13b   : > { %v4046_v8 = vpop.f32.mrf.mxu0 }
 0x13c   : > { %v1042_v10 = vadd.f32 %v4046_v8, %v4672_v6  ;;  %4183 = vmatprep.mubr.bf16.mxu1 %v1555_v5  ;;  %v1445_v16 = vmax.f32 %v1031_v9, 0.0 }
 0x13d   : > { %v1033_v12 = vpop.f32.mrf.mxu0  ;;  %4184 = vmatmul.mubr.bf16.gmra.mxu1 %v1556_v7 }
 0x13e   : > { %v1034_v13 = vadd.f32 %v4672_v6, %v1033_v12  ;;  %v1448_v14 = vmax.f32 %v1042_v10, 0.0 }
 0x13f   : > { %v4049_v15 = vpop.f32.mrf.mxu0 }
 0x140   : > { %v1446_v17 = vmax.f32 %v1034_v13, 0.0  ;;  %v1558_v21 = vpack.c.bf16 %v1448_v14, %v1447_v18  ;;  %v1055_v25 = vadd.f32 %v4049_v15, %v4672_v6 }
 0x141   : > { %v1046_v19 = vpop.f32.mrf.mxu0 }
 0x142   : > { %v1557_v20 = vpack.c.bf16 %v1446_v17, %v1445_v16  ;;  %v1047_v23 = vadd.f32 %v4672_v6, %v1046_v19  ;;  %v1451_v32 = vmax.f32 %v1055_v25, 0.0 }
 0x143   : > { %v4050_v22 = vpop.f32.mrf.mxu0 }
 0x144   : > { %v1058_v24 = vadd.f32 %v4050_v22, %v4672_v6  ;;  %4187 = vmatprep.mubr.bf16.mxu1 %v1557_v20  ;;  %v1449_v30 = vmax.f32 %v1047_v23, 0.0 }
 0x145   : > { %v1049_v26 = vpop.f32.mrf.mxu0  ;;  %4188 = vmatmul.mubr.bf16.gmra.mxu1 %v1558_v21 }
 0x146   : > { %v1050_v27 = vadd.f32 %v4672_v6, %v1049_v26  ;;  %v1452_v28 = vmax.f32 %v1058_v24, 0.0 }
 0x147   : > { %v4053_v29 = vpop.f32.mrf.mxu0 }
 0x148   : > { %v1450_v31 = vmax.f32 %v1050_v27, 0.0  ;;  %v1560_v35 = vpack.c.bf16 %v1452_v28, %v1451_v32  ;;  %v1071_v39 = vadd.f32 %v4053_v29, %v4672_v6 }
 0x149   : > { %v1062_v33 = vpop.f32.mrf.mxu0 }
 0x14a   : > { %v1559_v34 = vpack.c.bf16 %v1450_v31, %v1449_v30  ;;  %v1063_v37 = vadd.f32 %v4672_v6, %v1062_v33  ;;  %v1455_v46 = vmax.f32 %v1071_v39, 0.0 }
 0x14b   : > { %v4054_v36 = vpop.f32.mrf.mxu0 }
 0x14c   : > { %v1074_v38 = vadd.f32 %v4054_v36, %v4672_v6  ;;  %4191 = vmatprep.mubr.bf16.mxu1 %v1559_v34  ;;  %v1453_v44 = vmax.f32 %v1063_v37, 0.0 }
 0x14d   : > { %v1065_v40 = vpop.f32.mrf.mxu0  ;;  %4192 = vmatmul.mubr.bf16.gmra.mxu1 %v1560_v35 }
 0x14e   : > { %v1066_v41 = vadd.f32 %v4672_v6, %v1065_v40  ;;  %v1456_v42 = vmax.f32 %v1074_v38, 0.0 }
 0x14f   : > { %v4057_v43 = vpop.f32.mrf.mxu0 }
 0x150   : > { %v1454_v45 = vmax.f32 %v1066_v41, 0.0  ;;  %v1562_v49 = vpack.c.bf16 %v1456_v42, %v1455_v46  ;;  %v1087_v53 = vadd.f32 %v4057_v43, %v4672_v6 }
 0x151   : > { %v1078_v47 = vpop.f32.mrf.mxu0 }
 0x152   : > { %v1561_v48 = vpack.c.bf16 %v1454_v45, %v1453_v44  ;;  %v1079_v51 = vadd.f32 %v4672_v6, %v1078_v47  ;;  %v1459_v60 = vmax.f32 %v1087_v53, 0.0 }
 0x153   : > { %v4058_v50 = vpop.f32.mrf.mxu0 }
 0x154   : > { %v1090_v52 = vadd.f32 %v4058_v50, %v4672_v6  ;;  %4195 = vmatprep.mubr.bf16.mxu1 %v1561_v48  ;;  %v1457_v58 = vmax.f32 %v1079_v51, 0.0 }
 0x155   : > { %v1081_v54 = vpop.f32.mrf.mxu0  ;;  %4196 = vmatmul.mubr.bf16.gmra.mxu1 %v1562_v49 }
 0x156   : > { %v1082_v55 = vadd.f32 %v4672_v6, %v1081_v54  ;;  %v1460_v56 = vmax.f32 %v1090_v52, 0.0 }
 0x157   : > { %v4061_v57 = vpop.f32.mrf.mxu0 }
 0x158   : > { %v1458_v59 = vmax.f32 %v1082_v55, 0.0  ;;  %v1564_v63 = vpack.c.bf16 %v1460_v56, %v1459_v60  ;;  %v1103_v3 = vadd.f32 %v4061_v57, %v4672_v6 }
 0x159   : > { %v1094_v61 = vpop.f32.mrf.mxu0 }
 0x15a   : > { %v1563_v62 = vpack.c.bf16 %v1458_v59, %v1457_v58  ;;  %v1095_v1 = vadd.f32 %v4672_v6, %v1094_v61  ;;  %v1463_v11 = vmax.f32 %v1103_v3, 0.0 }
 0x15b   : > { %v4062_v0 = vpop.f32.mrf.mxu0 }
 0x15c   : > { %v1106_v2 = vadd.f32 %v4062_v0, %v4672_v6  ;;  %4199 = vmatprep.mubr.bf16.mxu1 %v1563_v62  ;;  %v1461_v9 = vmax.f32 %v1095_v1, 0.0 }
 0x15d   : > { %v1097_v4 = vpop.f32.mrf.mxu0  ;;  %4200 = vmatmul.mubr.bf16.gmra.mxu1 %v1564_v63 }
 0x15e   : > { %v1098_v5 = vadd.f32 %v4672_v6, %v1097_v4  ;;  %v1464_v7 = vmax.f32 %v1106_v2, 0.0 }
 0x15f   : > { %v4065_v8 = vpop.f32.mrf.mxu0 }
 0x160   : > { %v1462_v10 = vmax.f32 %v1098_v5, 0.0  ;;  %v1566_v14 = vpack.c.bf16 %v1464_v7, %v1463_v11  ;;  %v1119_v18 = vadd.f32 %v4065_v8, %v4672_v6 }
 0x161   : > { %v1110_v12 = vpop.f32.mrf.mxu0 }
 0x162   : > { %v1565_v13 = vpack.c.bf16 %v1462_v10, %v1461_v9  ;;  %v1111_v16 = vadd.f32 %v4672_v6, %v1110_v12  ;;  %v1467_v25 = vmax.f32 %v1119_v18, 0.0 }
 0x163   : > { %v4066_v15 = vpop.f32.mrf.mxu0 }
 0x164   : > { %v1122_v17 = vadd.f32 %v4066_v15, %v4672_v6  ;;  %4203 = vmatprep.mubr.bf16.mxu1 %v1565_v13  ;;  %v1465_v23 = vmax.f32 %v1111_v16, 0.0 }
 0x165   : > { %v1113_v19 = vpop.f32.mrf.mxu0  ;;  %4204 = vmatmul.mubr.bf16.gmra.mxu1 %v1566_v14 }
 0x166   : > { %v1114_v20 = vadd.f32 %v4672_v6, %v1113_v19  ;;  %v1468_v21 = vmax.f32 %v1122_v17, 0.0 }
 0x167   : > { %v4069_v22 = vpop.f32.mrf.mxu0 }
 0x168   : > { %v1466_v24 = vmax.f32 %v1114_v20, 0.0  ;;  %v1568_v28 = vpack.c.bf16 %v1468_v21, %v1467_v25  ;;  %v1135_v32 = vadd.f32 %v4069_v22, %v4672_v6 }
 0x169   : > { %v1126_v26 = vpop.f32.mrf.mxu0 }
 0x16a   : > { %v1567_v27 = vpack.c.bf16 %v1466_v24, %v1465_v23  ;;  %v1127_v30 = vadd.f32 %v4672_v6, %v1126_v26  ;;  %v1471_v39 = vmax.f32 %v1135_v32, 0.0 }
 0x16b   : > { %v4070_v29 = vpop.f32.mrf.mxu0 }
 0x16c   : > { %v1138_v31 = vadd.f32 %v4070_v29, %v4672_v6  ;;  %4207 = vmatprep.mubr.bf16.mxu1 %v1567_v27  ;;  %v1469_v37 = vmax.f32 %v1127_v30, 0.0 }
 0x16d   : > { %v1129_v33 = vpop.f32.mrf.mxu0  ;;  %4208 = vmatmul.mubr.bf16.gmra.mxu1 %v1568_v28 }
 0x16e   : > { %v1130_v34 = vadd.f32 %v4672_v6, %v1129_v33  ;;  %v1472_v35 = vmax.f32 %v1138_v31, 0.0 }
 0x16f   : > { %v4073_v36 = vpop.f32.mrf.mxu0 }
 0x170   : > { %v1470_v38 = vmax.f32 %v1130_v34, 0.0  ;;  %v1570_v42 = vpack.c.bf16 %v1472_v35, %v1471_v39  ;;  %v1151_v46 = vadd.f32 %v4073_v36, %v4672_v6 }
 0x171   : > { %v1142_v40 = vpop.f32.mrf.mxu0 }
 0x172   : > { %v1569_v41 = vpack.c.bf16 %v1470_v38, %v1469_v37  ;;  %v1143_v44 = vadd.f32 %v4672_v6, %v1142_v40  ;;  %v1475_v53 = vmax.f32 %v1151_v46, 0.0 }
 0x173   : > { %v4074_v43 = vpop.f32.mrf.mxu0 }
 0x174   : > { %v1154_v45 = vadd.f32 %v4074_v43, %v4672_v6  ;;  %4211 = vmatprep.mubr.bf16.mxu1 %v1569_v41  ;;  %v1473_v51 = vmax.f32 %v1143_v44, 0.0 }
 0x175   : > { %v1145_v47 = vpop.f32.mrf.mxu0  ;;  %4212 = vmatmul.mubr.bf16.gmra.mxu1 %v1570_v42 }
 0x176   : > { %v1146_v48 = vadd.f32 %v4672_v6, %v1145_v47  ;;  %v1476_v49 = vmax.f32 %v1154_v45, 0.0 }
 0x177   : > { %v4077_v50 = vpop.f32.mrf.mxu0 }
 0x178   : > { %v1474_v52 = vmax.f32 %v1146_v48, 0.0  ;;  %v1572_v56 = vpack.c.bf16 %v1476_v49, %v1475_v53  ;;  %v1167_v60 = vadd.f32 %v4077_v50, %v4672_v6 }
 0x179   : > { %v1158_v54 = vpop.f32.mrf.mxu0 }
 0x17a   : > { %v1571_v55 = vpack.c.bf16 %v1474_v52, %v1473_v51  ;;  %v1159_v58 = vadd.f32 %v4672_v6, %v1158_v54  ;;  %v1479_v3 = vmax.f32 %v1167_v60, 0.0 }
 0x17b   : > { %v4078_v57 = vpop.f32.mrf.mxu0 }
 0x17c   : > { %v1170_v59 = vadd.f32 %v4078_v57, %v4672_v6  ;;  %4215 = vmatprep.mubr.bf16.mxu1 %v1571_v55  ;;  %v1477_v1 = vmax.f32 %v1159_v58, 0.0 }
 0x17d   : > { %v1161_v61 = vpop.f32.mrf.mxu0  ;;  %4216 = vmatmul.mubr.bf16.gmra.mxu1 %v1572_v56 }
 0x17e   : > { %v1162_v62 = vadd.f32 %v4672_v6, %v1161_v61  ;;  %v1480_v63 = vmax.f32 %v1170_v59, 0.0 }
 0x17f   : > { %v4081_v0 = vpop.f32.mrf.mxu0 }
 0x180   : > { %v1478_v2 = vmax.f32 %v1162_v62, 0.0  ;;  %v1574_v7 = vpack.c.bf16 %v1480_v63, %v1479_v3  ;;  %v1183_v11 = vadd.f32 %v4081_v0, %v4672_v6 }
 0x181   : > { %v1174_v4 = vpop.f32.mrf.mxu0 }
 0x182   : > { %v1573_v5 = vpack.c.bf16 %v1478_v2, %v1477_v1  ;;  %v1175_v9 = vadd.f32 %v4672_v6, %v1174_v4  ;;  %v1483_v18 = vmax.f32 %v1183_v11, 0.0 }
 0x183   : > { %v4082_v8 = vpop.f32.mrf.mxu0 }
 0x184   : > { %v1186_v10 = vadd.f32 %v4082_v8, %v4672_v6  ;;  %4219 = vmatprep.mubr.bf16.mxu1 %v1573_v5  ;;  %v1481_v16 = vmax.f32 %v1175_v9, 0.0 }
 0x185   : > { %v1177_v12 = vpop.f32.mrf.mxu0  ;;  %4220 = vmatmul.mubr.bf16.gmra.mxu1 %v1574_v7 }
 0x186   : > { %v1178_v13 = vadd.f32 %v4672_v6, %v1177_v12  ;;  %v1484_v14 = vmax.f32 %v1186_v10, 0.0 }
 0x187   : > { %v4085_v15 = vpop.f32.mrf.mxu0 }
 0x188   : > { %v1482_v17 = vmax.f32 %v1178_v13, 0.0  ;;  %v1576_v21 = vpack.c.bf16 %v1484_v14, %v1483_v18  ;;  %v1199_v25 = vadd.f32 %v4085_v15, %v4672_v6 }
 0x189   : > { %v1190_v19 = vpop.f32.mrf.mxu0 }
 0x18a   : > { %v1575_v20 = vpack.c.bf16 %v1482_v17, %v1481_v16  ;;  %v1191_v23 = vadd.f32 %v4672_v6, %v1190_v19  ;;  %v1487_v32 = vmax.f32 %v1199_v25, 0.0 }
 0x18b   : > { %v4086_v22 = vpop.f32.mrf.mxu0 }
 0x18c   : > { %v1202_v24 = vadd.f32 %v4086_v22, %v4672_v6  ;;  %4223 = vmatprep.mubr.bf16.mxu1 %v1575_v20  ;;  %v1485_v30 = vmax.f32 %v1191_v23, 0.0 }
 0x18d   : > { %v1193_v26 = vpop.f32.mrf.mxu0  ;;  %4224 = vmatmul.mubr.bf16.gmra.mxu1 %v1576_v21 }
 0x18e   : > { %v1194_v27 = vadd.f32 %v4672_v6, %v1193_v26  ;;  %v1488_v28 = vmax.f32 %v1202_v24, 0.0 }
 0x18f   : > { %v4089_v29 = vpop.f32.mrf.mxu0 }
 0x190   : > { %v1486_v31 = vmax.f32 %v1194_v27, 0.0  ;;  %v1578_v35 = vpack.c.bf16 %v1488_v28, %v1487_v32  ;;  %v1215_v39 = vadd.f32 %v4089_v29, %v4672_v6 }
 0x191   : > { %v1206_v33 = vpop.f32.mrf.mxu0 }
 0x192   : > { %v1577_v34 = vpack.c.bf16 %v1486_v31, %v1485_v30  ;;  %v1207_v37 = vadd.f32 %v4672_v6, %v1206_v33  ;;  %v1491_v46 = vmax.f32 %v1215_v39, 0.0 }
 0x193   : > { %v4090_v36 = vpop.f32.mrf.mxu0 }
 0x194   : > { %v1218_v38 = vadd.f32 %v4090_v36, %v4672_v6  ;;  %4227 = vmatprep.mubr.bf16.mxu1 %v1577_v34  ;;  %v1489_v44 = vmax.f32 %v1207_v37, 0.0 }
 0x195   : > { %v1209_v40 = vpop.f32.mrf.mxu0  ;;  %4228 = vmatmul.mubr.bf16.gmra.mxu1 %v1578_v35 }
 0x196   : > { %v1210_v41 = vadd.f32 %v4672_v6, %v1209_v40  ;;  %v1492_v42 = vmax.f32 %v1218_v38, 0.0 }
 0x197   : > { %v4093_v43 = vpop.f32.mrf.mxu0 }
 0x198   : > { %v1490_v45 = vmax.f32 %v1210_v41, 0.0  ;;  %v1580_v49 = vpack.c.bf16 %v1492_v42, %v1491_v46  ;;  %v1231_v53 = vadd.f32 %v4093_v43, %v4672_v6 }
 0x199   : > { %v1222_v47 = vpop.f32.mrf.mxu0 }
 0x19a   : > { %v1579_v48 = vpack.c.bf16 %v1490_v45, %v1489_v44  ;;  %v1223_v51 = vadd.f32 %v4672_v6, %v1222_v47  ;;  %v1495_v60 = vmax.f32 %v1231_v53, 0.0 }
 0x19b   : > { %v4094_v50 = vpop.f32.mrf.mxu0 }
 0x19c   : > { %v1234_v52 = vadd.f32 %v4094_v50, %v4672_v6  ;;  %4231 = vmatprep.mubr.bf16.mxu1 %v1579_v48  ;;  %v1493_v58 = vmax.f32 %v1223_v51, 0.0 }
 0x19d   : > { %v1225_v54 = vpop.f32.mrf.mxu0  ;;  %4232 = vmatmul.mubr.bf16.gmra.mxu1 %v1580_v49 }
 0x19e   : > { %v1226_v55 = vadd.f32 %v4672_v6, %v1225_v54  ;;  %v1496_v56 = vmax.f32 %v1234_v52, 0.0 }
 0x19f   : > { %v4097_v57 = vpop.f32.mrf.mxu0 }
 0x1a0   : > { %v1494_v59 = vmax.f32 %v1226_v55, 0.0  ;;  %v1582_v63 = vpack.c.bf16 %v1496_v56, %v1495_v60  ;;  %v1247_v3 = vadd.f32 %v4097_v57, %v4672_v6 }
 0x1a1   : > { %v1238_v61 = vpop.f32.mrf.mxu0 }
 0x1a2   : > { %v1581_v62 = vpack.c.bf16 %v1494_v59, %v1493_v58  ;;  %v1239_v1 = vadd.f32 %v4672_v6, %v1238_v61  ;;  %v1499_v11 = vmax.f32 %v1247_v3, 0.0  ;;  %v4791_v59 = vld [vmem:[%s5648_s4] ss:$0 sm:$0xff] }
 0x1a3   : > { %v4098_v0 = vpop.f32.mrf.mxu0 }
 0x1a4   : > { %v1250_v2 = vadd.f32 %v4098_v0, %v4672_v6  ;;  %4235 = vmatprep.mubr.bf16.mxu1 %v1581_v62  ;;  %v1497_v9 = vmax.f32 %v1239_v1, 0.0 }
 0x1a5   : > { %v1241_v4 = vpop.f32.mrf.mxu0  ;;  %4236 = vmatmul.mubr.bf16.gmra.mxu1 %v1582_v63 }
 0x1a6   : > { %v1242_v5 = vadd.f32 %v4672_v6, %v1241_v4  ;;  %v1500_v7 = vmax.f32 %v1250_v2, 0.0 }
 0x1a7   : > { %v4101_v8 = vpop.f32.mrf.mxu0 }
 0x1a8   : > { %v1498_v10 = vmax.f32 %v1242_v5, 0.0  ;;  %v1584_v14 = vpack.c.bf16 %v1500_v7, %v1499_v11  ;;  %v1263_v18 = vadd.f32 %v4101_v8, %v4672_v6  ;;  %v4801_v11 = vld [vmem:[%s5649_s5] ss:$0 sm:$0xff] }
 0x1a9   : > { %v1254_v12 = vpop.f32.mrf.mxu0 }
 0x1aa   : > { %v1583_v13 = vpack.c.bf16 %v1498_v10, %v1497_v9  ;;  %v1255_v16 = vadd.f32 %v4672_v6, %v1254_v12  ;;  %v1503_v25 = vmax.f32 %v1263_v18, 0.0 }
 0x1ab   : > { %v4102_v15 = vpop.f32.mrf.mxu0 }
 0x1ac   : > { %v1266_v17 = vadd.f32 %v4102_v15, %v4672_v6  ;;  %4239 = vmatprep.mubr.bf16.mxu1 %v1583_v13  ;;  %v1501_v23 = vmax.f32 %v1255_v16, 0.0 }
 0x1ad   : > { %v1257_v19 = vpop.f32.mrf.mxu0  ;;  %4240 = vmatmul.mubr.bf16.gmra.mxu1 %v1584_v14 }
 0x1ae   : > { %v1258_v20 = vadd.f32 %v4672_v6, %v1257_v19  ;;  %v1504_v21 = vmax.f32 %v1266_v17, 0.0 }
 0x1af   : > { %v4105_v22 = vpop.f32.mrf.mxu0 }
 0x1b0   : > { %v1502_v24 = vmax.f32 %v1258_v20, 0.0  ;;  %v1586_v28 = vpack.c.bf16 %v1504_v21, %v1503_v25  ;;  %v1279_v32 = vadd.f32 %v4105_v22, %v4672_v6 }
 0x1b1   : > { %v1270_v26 = vpop.f32.mrf.mxu0 }
 0x1b2   : > { %v1585_v27 = vpack.c.bf16 %v1502_v24, %v1501_v23  ;;  %v1271_v30 = vadd.f32 %v4672_v6, %v1270_v26  ;;  %v1507_v39 = vmax.f32 %v1279_v32, 0.0 }
 0x1b3   : > { %v4106_v29 = vpop.f32.mrf.mxu0 }
 0x1b4   : > { %v1282_v31 = vadd.f32 %v4106_v29, %v4672_v6  ;;  %4243 = vmatprep.mubr.bf16.mxu1 %v1585_v27  ;;  %v1505_v37 = vmax.f32 %v1271_v30, 0.0 }
 0x1b5   : > { %v1273_v33 = vpop.f32.mrf.mxu0  ;;  %4244 = vmatmul.mubr.bf16.gmra.mxu1 %v1586_v28 }
 0x1b6   : > { %v1274_v34 = vadd.f32 %v4672_v6, %v1273_v33  ;;  %v1508_v35 = vmax.f32 %v1282_v31, 0.0 }
 0x1b7   : > { %v4109_v36 = vpop.f32.mrf.mxu0 }
 0x1b8   : > { %v1506_v38 = vmax.f32 %v1274_v34, 0.0  ;;  %v1588_v42 = vpack.c.bf16 %v1508_v35, %v1507_v39  ;;  %v1295_v43 = vadd.f32 %v4109_v36, %v4672_v6 }
 0x1b9   : > { %v1286_v40 = vpop.f32.mrf.mxu0 }
 0x1ba   : > { %v1587_v41 = vpack.c.bf16 %v1506_v38, %v1505_v37  ;;  %v1287_v45 = vadd.f32 %v4672_v6, %v1286_v40  ;;  %v1511_v49 = vmax.f32 %v1295_v43, 0.0 }
 0x1bb   : > { %v4110_v44 = vpop.f32.mrf.mxu0 }
 0x1bc   : > { %v1298_v46 = vadd.f32 %v4110_v44, %v4672_v6  ;;  %4247 = vmatprep.mubr.bf16.mxu1 %v1587_v41  ;;  %v1509_v52 = vmax.f32 %v1287_v45, 0.0 }
 0x1bd   : > { %v1289_v47 = vpop.f32.mrf.mxu0  ;;  %4248 = vmatmul.mubr.bf16.gmra.mxu1 %v1588_v42 }
 0x1be   : > { %v1290_v48 = vadd.f32 %v4672_v6, %v1289_v47  ;;  %v1512_v50 = vmax.f32 %v1298_v46, 0.0 }
 0x1bf   : > { %v4113_v51 = vpop.f32.mrf.mxu0 }
 0x1c0   : > { %v1510_v53 = vmax.f32 %v1290_v48, 0.0  ;;  %v1590_v56 = vpack.c.bf16 %v1512_v50, %v1511_v49  ;;  %v1311_v57 = vadd.f32 %v4113_v51, %v4672_v6 }
 0x1c1   : > { %v1302_v54 = vpop.f32.mrf.mxu0 }
 0x1c2   : > { %v1589_v55 = vpack.c.bf16 %v1510_v53, %v1509_v52  ;;  %v1303_v60 = vadd.f32 %v4672_v6, %v1302_v54  ;;  %v1515_v2 = vmax.f32 %v1311_v57, 0.0 }
 0x1c3   : > { %v4114_v58 = vpop.f32.mrf.mxu0 }
 0x1c4   : > { %v1314_v61 = vadd.f32 %v4114_v58, %v4672_v6  ;;  %4251 = vmatprep.mubr.bf16.mxu1 %v1589_v55  ;;  %v1513_v7 = vmax.f32 %v1303_v60, 0.0 }
 0x1c5   : > { %v1305_v62 = vpop.f32.mrf.mxu0  ;;  %v4157_v63 = vpop.f32.mrf.mxu1  ;;  %4252 = vmatmul.mubr.bf16.gmra.mxu1 %v1590_v56 }
 0x1c6   : > { %v1306_v0 = vadd.f32 %v4672_v6, %v1305_v62  ;;  %v1718_v1 = vadd.f32 %v4157_v63, %v4791_v59  ;;  %v1516_v3 = vmax.f32 %v1314_v61, 0.0 }
 0x1c7   : > { %v4117_v4 = vpop.f32.mrf.mxu0  ;;  %v1709_v5 = vpop.f32.mrf.mxu1 }
 0x1c8   : > { %v1514_v8 = vmax.f32 %v1306_v0, 0.0  ;;  %v2222_v9 = vmax.f32 %v1718_v1, 0.0  ;;  %v1327_v10 = vadd.f32 %v4117_v4, %v4672_v6  ;;  %v1710_v12 = vadd.f32 %v4791_v59, %v1709_v5 }
 0x1c9   : > { %v1318_v13 = vpop.f32.mrf.mxu0  ;;  %v4158_v14 = vpop.f32.mrf.mxu1  ;;  %v1592_v18 = vpack.c.bf16 %v1516_v3, %v1515_v2 }
 0x1ca   : > { %v1591_v15 = vpack.c.bf16 %v1514_v8, %v1513_v7  ;;  %v1319_v16 = vadd.f32 %v4672_v6, %v1318_v13  ;;  %v1721_v17 = vadd.f32 %v4158_v14, %v4791_v59  ;;  %v2220_v19 = vmax.f32 %v1710_v12, 0.0 }
 0x1cb   : > { %v4118_v20 = vpop.f32.mrf.mxu0  ;;  %v1712_v21 = vpop.f32.mrf.mxu1  ;;  %v2356_v22 = vmul.f32 %v4801_v11, %v2222_v9  ;;  %v1519_v23 = vmax.f32 %v1327_v10, 0.0  ;;  %v4828_v9 = vld [vmem:[%s5646_s2] ss:$0 sm:$0xff] }
 0x1cc   : > { %v2223_v24 = vmax.f32 %v1721_v17, 0.0  ;;  %v1330_v25 = vadd.f32 %v4118_v20, %v4672_v6  ;;  %v1713_v26 = vadd.f32 %v4791_v59, %v1712_v21  ;;  %4255 = vmatprep.mubr.bf16.mxu1 %v1591_v15  ;;  %v1517_v27 = vmax.f32 %v1319_v16, 0.0 }
 0x1cd   : > { %2486 = vadd.xlane.f32.xlu1 %v2356_v22  ;;  %v1321_v28 = vpop.f32.mrf.mxu0  ;;  %v4161_v29 = vpop.f32.mrf.mxu1  ;;  %4256 = vmatmul.mubr.bf16.gmra.mxu1 %v1592_v18  ;;  %v2354_v30 = vmul.f32 %v4801_v11, %v2220_v19 }
 0x1ce   : > { %v1520_v31 = vmax.f32 %v1330_v25, 0.0  ;;  %v2221_v32 = vmax.f32 %v1713_v26, 0.0  ;;  %v1322_v33 = vadd.f32 %v4672_v6, %v1321_v28  ;;  %v1734_v34 = vadd.f32 %v4161_v29, %v4791_v59 }
 0x1cf   : > { %2482 = vadd.xlane.f32.xlu0 %v2354_v30  ;;  %v4121_v35 = vpop.f32.mrf.mxu0  ;;  %v1725_v36 = vpop.f32.mrf.mxu1  ;;  %v2357_v37 = vmul.f32 %v4801_v11, %v2223_v24 }
 0x1d0   : > { %v1594_v38 = vpack.c.bf16 %v1520_v31, %v1519_v23  ;;  %v1518_v39 = vmax.f32 %v1322_v33, 0.0  ;;  %v2226_v40 = vmax.f32 %v1734_v34, 0.0  ;;  %v1343_v41 = vadd.f32 %v4121_v35, %v4672_v6 }
 0x1d1   : > { %v1726_v42 = vadd.f32 %v4791_v59, %v1725_v36  ;;  %2488 = vadd.xlane.f32.xlu1 %v2357_v37  ;;  %v1334_v43 = vpop.f32.mrf.mxu0  ;;  %v4162_v44 = vpop.f32.mrf.mxu1  ;;  %v2355_v45 = vmul.f32 %v4801_v11, %v2221_v32 }
 0x1d2   : > { %v1593_v46 = vpack.c.bf16 %v1518_v39, %v1517_v27  ;;  %v1335_v47 = vadd.f32 %v4672_v6, %v1334_v43  ;;  %v1737_v48 = vadd.f32 %v4162_v44, %v4791_v59  ;;  %v1523_v55 = vmax.f32 %v1343_v41, 0.0 }
 0x1d3   : > { %2484 = vadd.xlane.f32.xlu0 %v2355_v45  ;;  %v4122_v49 = vpop.f32.mrf.mxu0  ;;  %v1728_v50 = vpop.f32.mrf.mxu1  ;;  %v2224_v51 = vmax.f32 %v1726_v42, 0.0  ;;  %v2360_v58 = vmul.f32 %v4801_v11, %v2226_v40 }
 0x1d4   : > { %v2227_v52 = vmax.f32 %v1737_v48, 0.0  ;;  %v1346_v53 = vadd.f32 %v4122_v49, %v4672_v6  ;;  %v1729_v54 = vadd.f32 %v4791_v59, %v1728_v50  ;;  %4259 = vmatprep.mubr.bf16.mxu1 %v1593_v46  ;;  %v1521_v60 = vmax.f32 %v1335_v47, 0.0 }
 0x1d5   : > { %v1337_v56 = vpop.f32.mrf.mxu0  ;;  %v4165_v57 = vpop.f32.mrf.mxu1  ;;  %4260 = vmatmul.mubr.bf16.gmra.mxu1 %v1594_v38  ;;  %v2358_v5 = vmul.f32 %v4801_v11, %v2224_v51 }
 0x1d6   : > { %v1524_v61 = vmax.f32 %v1346_v53, 0.0  ;;  %v1338_v62 = vadd.f32 %v4672_v6, %v1337_v56  ;;  %v1750_v63 = vadd.f32 %v4165_v57, %v4791_v59  ;;  %v2225_v0 = vmax.f32 %v1729_v54, 0.0 }
 0x1d7   : > { %2494 = vadd.xlane.f32.xlu0 %v2360_v58  ;;  %v4125_v1 = vpop.f32.mrf.mxu0  ;;  %v1741_v2 = vpop.f32.mrf.mxu1  ;;  %v2361_v3 = vmul.f32 %v4801_v11, %v2227_v52 }
 0x1d8   : > { %v1522_v4 = vmax.f32 %v1338_v62, 0.0  ;;  %v1596_v7 = vpack.c.bf16 %v1524_v61, %v1523_v55  ;;  %v2230_v8 = vmax.f32 %v1750_v63, 0.0  ;;  %v1359_v6 = vadd.f32 %v4828_v9, %v4125_v1 }
 0x1d9   : > { %v1742_v10 = vadd.f32 %v4791_v59, %v1741_v2  ;;  %2496 = vadd.xlane.f32.xlu1 %v2361_v3  ;;  %v1350_v12 = vpop.f32.mrf.mxu0  ;;  %v4166_v13 = vpop.f32.mrf.mxu1  ;;  %v2359_v19 = vmul.f32 %v4801_v11, %v2225_v0 }
 0x1da   : > { %v1595_v14 = vpack.c.bf16 %v1522_v4, %v1521_v60  ;;  %v1351_v15 = vadd.f32 %v4828_v9, %v1350_v12  ;;  %v1753_v16 = vadd.f32 %v4166_v13, %v4791_v59  ;;  %v1527_v24 = vmax.f32 %v1359_v6, 0.0 }
 0x1db   : > { %2490 = vadd.xlane.f32.xlu0 %v2358_v5  ;;  %v4126_v17 = vpop.f32.mrf.mxu0  ;;  %v1744_v18 = vpop.f32.mrf.mxu1  ;;  %v2228_v20 = vmax.f32 %v1742_v10, 0.0  ;;  %v2364_v27 = vmul.f32 %v4801_v11, %v2230_v8 }
 0x1dc   : > { %v2231_v21 = vmax.f32 %v1753_v16, 0.0  ;;  %v1362_v22 = vadd.f32 %v4828_v9, %v4126_v17  ;;  %v1745_v23 = vadd.f32 %v4791_v59, %v1744_v18  ;;  %4263 = vmatprep.mubr.bf16.mxu1 %v1595_v14  ;;  %v1525_v28 = vmax.f32 %v1351_v15, 0.0 }
 0x1dd   : > { %2492 = vadd.xlane.f32.xlu1 %v2359_v19  ;;  %v1353_v25 = vpop.f32.mrf.mxu0  ;;  %v4169_v26 = vpop.f32.mrf.mxu1  ;;  %4264 = vmatmul.mubr.bf16.gmra.mxu1 %v1596_v7  ;;  %v2362_v37 = vmul.f32 %v4801_v11, %v2228_v20 }
 0x1de   : > { %v1528_v29 = vmax.f32 %v1362_v22, 0.0  ;;  %v1354_v30 = vadd.f32 %v4828_v9, %v1353_v25  ;;  %v1766_v31 = vadd.f32 %v4169_v26, %v4791_v59  ;;  %v2229_v32 = vmax.f32 %v1745_v23, 0.0 }
 0x1df   : > { %2502 = vadd.xlane.f32.xlu0 %v2364_v27  ;;  %v4129_v33 = vpop.f32.mrf.mxu0  ;;  %v1757_v34 = vpop.f32.mrf.mxu1  ;;  %v2365_v35 = vmul.f32 %v4801_v11, %v2231_v21 }
 0x1e0   : > { %v1526_v36 = vmax.f32 %v1354_v30, 0.0  ;;  %v1598_v38 = vpack.c.bf16 %v1528_v29, %v1527_v24  ;;  %v2234_v39 = vmax.f32 %v1766_v31, 0.0  ;;  %v1375_v40 = vadd.f32 %v4828_v9, %v4129_v33 }
 0x1e1   : > { %v1758_v41 = vadd.f32 %v4791_v59, %v1757_v34  ;;  %2504 = vadd.xlane.f32.xlu1 %v2365_v35  ;;  %v1366_v42 = vpop.f32.mrf.mxu0  ;;  %v4170_v43 = vpop.f32.mrf.mxu1  ;;  %v2363_v49 = vmul.f32 %v4801_v11, %v2229_v32 }
 0x1e2   : > { %v1597_v44 = vpack.c.bf16 %v1526_v36, %v1525_v28  ;;  %v1367_v45 = vadd.f32 %v4828_v9, %v1366_v42  ;;  %v1769_v46 = vadd.f32 %v4170_v43, %v4791_v59  ;;  %v1531_v54 = vmax.f32 %v1375_v40, 0.0 }
 0x1e3   : > { %2498 = vadd.xlane.f32.xlu0 %v2362_v37  ;;  %v4130_v47 = vpop.f32.mrf.mxu0  ;;  %v1760_v48 = vpop.f32.mrf.mxu1  ;;  %v2232_v50 = vmax.f32 %v1758_v41, 0.0  ;;  %v2368_v57 = vmul.f32 %v4801_v11, %v2234_v39 }
 0x1e4   : > { %v2235_v51 = vmax.f32 %v1769_v46, 0.0  ;;  %v1378_v52 = vadd.f32 %v4828_v9, %v4130_v47  ;;  %v1761_v53 = vadd.f32 %v4791_v59, %v1760_v48  ;;  %4267 = vmatprep.mubr.bf16.mxu1 %v1597_v44  ;;  %v1529_v58 = vmax.f32 %v1367_v45, 0.0 }
 0x1e5   : > { %2500 = vadd.xlane.f32.xlu1 %v2363_v49  ;;  %v1369_v55 = vpop.f32.mrf.mxu0  ;;  %v4173_v56 = vpop.f32.mrf.mxu1  ;;  %4268 = vmatmul.mubr.bf16.gmra.mxu1 %v1598_v38  ;;  %v2366_v4 = vmul.f32 %v4801_v11, %v2232_v50 }
 0x1e6   : > { %v1532_v60 = vmax.f32 %v1378_v52, 0.0  ;;  %v1370_v61 = vadd.f32 %v4828_v9, %v1369_v55  ;;  %v1782_v62 = vadd.f32 %v4173_v56, %v4791_v59  ;;  %v2233_v63 = vmax.f32 %v1761_v53, 0.0 }
 0x1e7   : > { %2510 = vadd.xlane.f32.xlu0 %v2368_v57  ;;  %v4133_v0 = vpop.f32.mrf.mxu0  ;;  %v1773_v1 = vpop.f32.mrf.mxu1  ;;  %v2369_v2 = vmul.f32 %v4801_v11, %v2235_v51 }
 0x1e8   : > { %v1530_v3 = vmax.f32 %v1370_v61, 0.0  ;;  %v1600_v5 = vpack.c.bf16 %v1532_v60, %v1531_v54  ;;  %v2238_v7 = vmax.f32 %v1782_v62, 0.0  ;;  %v1391_v8 = vadd.f32 %v4828_v9, %v4133_v0 }
 0x1e9   : > { %v1774_v6 = vadd.f32 %v4791_v59, %v1773_v1  ;;  %2512 = vadd.xlane.f32.xlu1 %v2369_v2  ;;  %v1382_v10 = vpop.f32.mrf.mxu0  ;;  %v4174_v12 = vpop.f32.mrf.mxu1  ;;  %v2367_v18 = vmul.f32 %v4801_v11, %v2233_v63 }
 0x1ea   : > { %v1599_v13 = vpack.c.bf16 %v1530_v3, %v1529_v58  ;;  %v1383_v14 = vadd.f32 %v4828_v9, %v1382_v10  ;;  %v1785_v15 = vadd.f32 %v4174_v12, %v4791_v59  ;;  %v1535_v23 = vmax.f32 %v1391_v8, 0.0 }
 0x1eb   : > { %2506 = vadd.xlane.f32.xlu0 %v2366_v4  ;;  %v4134_v16 = vpop.f32.mrf.mxu0  ;;  %v1776_v17 = vpop.f32.mrf.mxu1  ;;  %v2236_v19 = vmax.f32 %v1774_v6, 0.0  ;;  %v2372_v26 = vmul.f32 %v4801_v11, %v2238_v7 }
 0x1ec   : > { %v2239_v20 = vmax.f32 %v1785_v15, 0.0  ;;  %v1394_v21 = vadd.f32 %v4828_v9, %v4134_v16  ;;  %v1777_v22 = vadd.f32 %v4791_v59, %v1776_v17  ;;  %4271 = vmatprep.mubr.bf16.mxu1 %v1599_v13  ;;  %v1533_v27 = vmax.f32 %v1383_v14, 0.0 }
 0x1ed   : > { %2508 = vadd.xlane.f32.xlu1 %v2367_v18  ;;  %v1385_v24 = vpop.f32.mrf.mxu0  ;;  %v4177_v25 = vpop.f32.mrf.mxu1  ;;  %4272 = vmatmul.mubr.bf16.gmra.mxu1 %v1600_v5  ;;  %v2370_v36 = vmul.f32 %v4801_v11, %v2236_v19 }
 0x1ee   : > { %v1536_v28 = vmax.f32 %v1394_v21, 0.0  ;;  %v1386_v29 = vadd.f32 %v4828_v9, %v1385_v24  ;;  %v1798_v30 = vadd.f32 %v4177_v25, %v4791_v59  ;;  %v2237_v31 = vmax.f32 %v1777_v22, 0.0 }
 0x1ef   : > { %2518 = vadd.xlane.f32.xlu0 %v2372_v26  ;;  %v4137_v32 = vpop.f32.mrf.mxu0  ;;  %v1789_v33 = vpop.f32.mrf.mxu1  ;;  %v2373_v34 = vmul.f32 %v4801_v11, %v2239_v20 }
 0x1f0   : > { %v1534_v35 = vmax.f32 %v1386_v29, 0.0  ;;  %v1602_v37 = vpack.c.bf16 %v1536_v28, %v1535_v23  ;;  %v2242_v38 = vmax.f32 %v1798_v30, 0.0  ;;  %v1407_v39 = vadd.f32 %v4828_v9, %v4137_v32 }
 0x1f1   : > { %v1790_v40 = vadd.f32 %v4791_v59, %v1789_v33  ;;  %2520 = vadd.xlane.f32.xlu1 %v2373_v34  ;;  %v1398_v41 = vpop.f32.mrf.mxu0  ;;  %v4178_v42 = vpop.f32.mrf.mxu1  ;;  %v2371_v48 = vmul.f32 %v4801_v11, %v2237_v31 }
 0x1f2   : > { %v1601_v43 = vpack.c.bf16 %v1534_v35, %v1533_v27  ;;  %v1399_v44 = vadd.f32 %v4828_v9, %v1398_v41  ;;  %v1801_v45 = vadd.f32 %v4178_v42, %v4791_v59  ;;  %v1539_v52 = vmax.f32 %v1407_v39, 0.0 }
 0x1f3   : > { %2514 = vadd.xlane.f32.xlu0 %v2370_v36  ;;  %v4138_v46 = vpop.f32.mrf.mxu0  ;;  %v1792_v47 = vpop.f32.mrf.mxu1  ;;  %v2240_v53 = vmax.f32 %v1790_v40, 0.0  ;;  %v2376_v56 = vmul.f32 %v4801_v11, %v2242_v38 }
 0x1f4   : > { %v2243_v49 = vmax.f32 %v1801_v45, 0.0  ;;  %v1410_v50 = vadd.f32 %v4828_v9, %v4138_v46  ;;  %v1793_v51 = vadd.f32 %v4791_v59, %v1792_v47  ;;  %4275 = vmatprep.mubr.bf16.mxu1 %v1601_v43  ;;  %v1537_v57 = vmax.f32 %v1399_v44, 0.0 }
 0x1f5   : > { %2516 = vadd.xlane.f32.xlu1 %v2371_v48  ;;  %v1401_v54 = vpop.f32.mrf.mxu0  ;;  %v4181_v55 = vpop.f32.mrf.mxu1  ;;  %4276 = vmatmul.mubr.bf16.gmra.mxu1 %v1602_v37  ;;  %v2374_v7 = vmul.f32 %v4801_v11, %v2240_v53 }
 0x1f6   : > { %v1540_v58 = vmax.f32 %v1410_v50, 0.0  ;;  %v1402_v60 = vadd.f32 %v4828_v9, %v1401_v54  ;;  %v1814_v61 = vadd.f32 %v4181_v55, %v4791_v59  ;;  %v2241_v62 = vmax.f32 %v1793_v51, 0.0 }
 0x1f7   : > { %2526 = vadd.xlane.f32.xlu0 %v2376_v56  ;;  %v1805_v63 = vpop.f32.mrf.mxu1  ;;  %v2377_v0 = vmul.f32 %v4801_v11, %v2243_v49 }
 0x1f8   : > { %v1538_v1 = vmax.f32 %v1402_v60, 0.0  ;;  %v1604_v2 = vpack.c.bf16 %v1540_v58, %v1539_v52  ;;  %v2246_v3 = vmax.f32 %v1814_v61, 0.0  ;;  %v1806_v4 = vadd.f32 %v4791_v59, %v1805_v63 }
 0x1f9   : > { %2528 = vadd.xlane.f32.xlu1 %v2377_v0  ;;  %v4182_v5 = vpop.f32.mrf.mxu1  ;;  %v2375_v10 = vmul.f32 %v4801_v11, %v2241_v62 }
 0x1fa   : > { %v1603_v8 = vpack.c.bf16 %v1538_v1, %v1537_v57  ;;  %v1817_v6 = vadd.f32 %v4182_v5, %v4791_v59  ;;  %v2244_v14 = vmax.f32 %v1806_v4, 0.0  ;;  %v2380_v16 = vmul.f32 %v4801_v11, %v2246_v3 }
 0x1fb   : > { %2522 = vadd.xlane.f32.xlu0 %v2374_v7  ;;  %v1808_v9 = vpop.f32.mrf.mxu1 }
 0x1fc   : > { %v2247_v12 = vmax.f32 %v1817_v6, 0.0  ;;  %v1809_v13 = vadd.f32 %v4791_v59, %v1808_v9  ;;  %4279 = vmatprep.mubr.bf16.mxu1 %v1603_v8  ;;  %v2378_v24 = vmul.f32 %v4801_v11, %v2244_v14 }
 0x1fd   : > { %2524 = vadd.xlane.f32.xlu1 %v2375_v10  ;;  %v4185_v15 = vpop.f32.mrf.mxu1  ;;  %4280 = vmatmul.mubr.bf16.gmra.mxu1 %v1604_v2 }
 0x1fe   : > { %v1830_v17 = vadd.f32 %v4185_v15, %v4791_v59  ;;  %v2381_v18 = vmul.f32 %v4801_v11, %v2247_v12  ;;  %v2245_v19 = vmax.f32 %v1809_v13, 0.0 }
 0x1ff   : > { %2534 = vadd.xlane.f32.xlu0 %v2380_v16  ;;  %v1821_v20 = vpop.f32.mrf.mxu1 }
 0x200   : > { %v2250_v21 = vmax.f32 %v1830_v17, 0.0  ;;  %v1822_v22 = vadd.f32 %v4791_v59, %v1821_v20  ;;  %v2379_v27 = vmul.f32 %v4801_v11, %v2245_v19 }
 0x201   : > { %2536 = vadd.xlane.f32.xlu1 %v2381_v18  ;;  %v4186_v23 = vpop.f32.mrf.mxu1 }
 0x202   : > { %v1833_v25 = vadd.f32 %v4186_v23, %v4791_v59  ;;  %v2248_v30 = vmax.f32 %v1822_v22, 0.0  ;;  %v2384_v32 = vmul.f32 %v4801_v11, %v2250_v21 }
 0x203   : > { %2530 = vadd.xlane.f32.xlu0 %v2378_v24  ;;  %v1824_v26 = vpop.f32.mrf.mxu1 }
 0x204   : > { %v2251_v28 = vmax.f32 %v1833_v25, 0.0  ;;  %v1825_v29 = vadd.f32 %v4791_v59, %v1824_v26  ;;  %v2382_v40 = vmul.f32 %v4801_v11, %v2248_v30 }
 0x205   : > { %2532 = vadd.xlane.f32.xlu1 %v2379_v27  ;;  %v4189_v31 = vpop.f32.mrf.mxu1 }
 0x206   : > { %v1846_v33 = vadd.f32 %v4189_v31, %v4791_v59  ;;  %v2385_v34 = vmul.f32 %v4801_v11, %v2251_v28  ;;  %v2249_v35 = vmax.f32 %v1825_v29, 0.0 }
 0x207   : > { %2542 = vadd.xlane.f32.xlu0 %v2384_v32  ;;  %v1837_v36 = vpop.f32.mrf.mxu1 }
 0x208   : > { %v2254_v37 = vmax.f32 %v1846_v33, 0.0  ;;  %v1838_v38 = vadd.f32 %v4791_v59, %v1837_v36  ;;  %v2383_v43 = vmul.f32 %v4801_v11, %v2249_v35 }
 0x209   : > { %2544 = vadd.xlane.f32.xlu1 %v2385_v34  ;;  %v4190_v39 = vpop.f32.mrf.mxu1 }
 0x20a   : > { %v1849_v41 = vadd.f32 %v4190_v39, %v4791_v59  ;;  %v2252_v46 = vmax.f32 %v1838_v38, 0.0  ;;  %v2388_v48 = vmul.f32 %v4801_v11, %v2254_v37 }
 0x20b   : > { %2538 = vadd.xlane.f32.xlu0 %v2382_v40  ;;  %v1840_v42 = vpop.f32.mrf.mxu1 }
 0x20c   : > { %v2255_v44 = vmax.f32 %v1849_v41, 0.0  ;;  %v1841_v45 = vadd.f32 %v4791_v59, %v1840_v42  ;;  %v2386_v56 = vmul.f32 %v4801_v11, %v2252_v46 }
 0x20d   : > { %2540 = vadd.xlane.f32.xlu1 %v2383_v43  ;;  %v4193_v47 = vpop.f32.mrf.mxu1 }
 0x20e   : > { %v1862_v49 = vadd.f32 %v4193_v47, %v4791_v59  ;;  %v2389_v50 = vmul.f32 %v4801_v11, %v2255_v44  ;;  %v2253_v51 = vmax.f32 %v1841_v45, 0.0 }
 0x20f   : > { %2550 = vadd.xlane.f32.xlu0 %v2388_v48  ;;  %v1853_v52 = vpop.f32.mrf.mxu1 }
 0x210   : > { %v2258_v53 = vmax.f32 %v1862_v49, 0.0  ;;  %v1854_v54 = vadd.f32 %v4791_v59, %v1853_v52  ;;  %v2387_v60 = vmul.f32 %v4801_v11, %v2253_v51 }
 0x211   : > { %2552 = vadd.xlane.f32.xlu1 %v2389_v50  ;;  %v4194_v55 = vpop.f32.mrf.mxu1 }
 0x212   : > { %v1865_v57 = vadd.f32 %v4194_v55, %v4791_v59  ;;  %v2256_v63 = vmax.f32 %v1854_v54, 0.0  ;;  %v2392_v1 = vmul.f32 %v4801_v11, %v2258_v53 }
 0x213   : > { %2546 = vadd.xlane.f32.xlu0 %v2386_v56  ;;  %v1856_v58 = vpop.f32.mrf.mxu1 }
 0x214   : > { %v2259_v61 = vmax.f32 %v1865_v57, 0.0  ;;  %v1857_v62 = vadd.f32 %v4791_v59, %v1856_v58  ;;  %v2390_v9 = vmul.f32 %v4801_v11, %v2256_v63 }
 0x215   : > { %2548 = vadd.xlane.f32.xlu1 %v2387_v60  ;;  %v4197_v0 = vpop.f32.mrf.mxu1 }
 0x216   : > { %v1878_v2 = vadd.f32 %v4197_v0, %v4791_v59  ;;  %v2393_v3 = vmul.f32 %v4801_v11, %v2259_v61  ;;  %v2257_v4 = vmax.f32 %v1857_v62, 0.0 }
 0x217   : > { %2558 = vadd.xlane.f32.xlu0 %v2392_v1  ;;  %v1869_v5 = vpop.f32.mrf.mxu1 }
 0x218   : > { %v2262_v7 = vmax.f32 %v1878_v2, 0.0  ;;  %v1870_v8 = vadd.f32 %v4791_v59, %v1869_v5  ;;  %v2391_v13 = vmul.f32 %v4801_v11, %v2257_v4 }
 0x219   : > { %2560 = vadd.xlane.f32.xlu1 %v2393_v3  ;;  %v4198_v6 = vpop.f32.mrf.mxu1 }
 0x21a   : > { %v1881_v10 = vadd.f32 %v4198_v6, %v4791_v59  ;;  %v2260_v16 = vmax.f32 %v1870_v8, 0.0  ;;  %v2396_v18 = vmul.f32 %v4801_v11, %v2262_v7 }
 0x21b   : > { %2554 = vadd.xlane.f32.xlu0 %v2390_v9  ;;  %v1872_v12 = vpop.f32.mrf.mxu1 }
 0x21c   : > { %v2263_v14 = vmax.f32 %v1881_v10, 0.0  ;;  %v1873_v15 = vadd.f32 %v4791_v59, %v1872_v12  ;;  %v2394_v26 = vmul.f32 %v4801_v11, %v2260_v16 }
 0x21d   : > { %2556 = vadd.xlane.f32.xlu1 %v2391_v13  ;;  %v4201_v17 = vpop.f32.mrf.mxu1 }
 0x21e   : > { %v1894_v19 = vadd.f32 %v4201_v17, %v4791_v59  ;;  %v2397_v20 = vmul.f32 %v4801_v11, %v2263_v14  ;;  %v2261_v21 = vmax.f32 %v1873_v15, 0.0 }
 0x21f   : > { %2566 = vadd.xlane.f32.xlu0 %v2396_v18  ;;  %v1885_v22 = vpop.f32.mrf.mxu1 }
 0x220   : > { %v2266_v23 = vmax.f32 %v1894_v19, 0.0  ;;  %v1886_v24 = vadd.f32 %v4791_v59, %v1885_v22  ;;  %v2395_v29 = vmul.f32 %v4801_v11, %v2261_v21 }
 0x221   : > { %2568 = vadd.xlane.f32.xlu1 %v2397_v20  ;;  %v4202_v25 = vpop.f32.mrf.mxu1 }
 0x222   : > { %v1897_v27 = vadd.f32 %v4202_v25, %v4791_v59  ;;  %v2264_v32 = vmax.f32 %v1886_v24, 0.0  ;;  %v2400_v34 = vmul.f32 %v4801_v11, %v2266_v23 }
 0x223   : > { %2562 = vadd.xlane.f32.xlu0 %v2394_v26  ;;  %v1888_v28 = vpop.f32.mrf.mxu1 }
 0x224   : > { %v2267_v30 = vmax.f32 %v1897_v27, 0.0  ;;  %v1889_v31 = vadd.f32 %v4791_v59, %v1888_v28  ;;  %v2398_v42 = vmul.f32 %v4801_v11, %v2264_v32 }
 0x225   : > { %2564 = vadd.xlane.f32.xlu1 %v2395_v29  ;;  %v4205_v33 = vpop.f32.mrf.mxu1 }
 0x226   : > { %v1910_v35 = vadd.f32 %v4205_v33, %v4791_v59  ;;  %v2401_v36 = vmul.f32 %v4801_v11, %v2267_v30  ;;  %v2265_v37 = vmax.f32 %v1889_v31, 0.0 }
 0x227   : > { %2574 = vadd.xlane.f32.xlu0 %v2400_v34  ;;  %v1901_v38 = vpop.f32.mrf.mxu1 }
 0x228   : > { %v2270_v39 = vmax.f32 %v1910_v35, 0.0  ;;  %v1902_v40 = vadd.f32 %v4791_v59, %v1901_v38  ;;  %v2399_v45 = vmul.f32 %v4801_v11, %v2265_v37 }
 0x229   : > { %2576 = vadd.xlane.f32.xlu1 %v2401_v36  ;;  %v4206_v41 = vpop.f32.mrf.mxu1 }
 0x22a   : > { %v1913_v43 = vadd.f32 %v4206_v41, %v4791_v59  ;;  %v2268_v48 = vmax.f32 %v1902_v40, 0.0  ;;  %v2404_v50 = vmul.f32 %v4801_v11, %v2270_v39 }
 0x22b   : > { %2570 = vadd.xlane.f32.xlu0 %v2398_v42  ;;  %v1904_v44 = vpop.f32.mrf.mxu1 }
 0x22c   : > { %v2271_v46 = vmax.f32 %v1913_v43, 0.0  ;;  %v1905_v47 = vadd.f32 %v4791_v59, %v1904_v44  ;;  %v2402_v58 = vmul.f32 %v4801_v11, %v2268_v48 }
 0x22d   : > { %2572 = vadd.xlane.f32.xlu1 %v2399_v45  ;;  %v4209_v49 = vpop.f32.mrf.mxu1 }
 0x22e   : > { %v1926_v51 = vadd.f32 %v4209_v49, %v4791_v59  ;;  %v2405_v52 = vmul.f32 %v4801_v11, %v2271_v46  ;;  %v2269_v53 = vmax.f32 %v1905_v47, 0.0 }
 0x22f   : > { %2582 = vadd.xlane.f32.xlu0 %v2404_v50  ;;  %v1917_v54 = vpop.f32.mrf.mxu1  ;;  %v3003_v50 = vlaneseq }
 0x230   : > { %v2274_v55 = vmax.f32 %v1926_v51, 0.0  ;;  %v1918_v56 = vadd.f32 %v4791_v59, %v1917_v54  ;;  %v2403_v62 = vmul.f32 %v4801_v11, %v2269_v53 }
 0x231   : > { %2584 = vadd.xlane.f32.xlu1 %v2405_v52  ;;  %v4210_v57 = vpop.f32.mrf.mxu1 }
 0x232   : > { %v1929_v60 = vadd.f32 %v4210_v57, %v4791_v59  ;;  %v2272_v1 = vmax.f32 %v1918_v56, 0.0  ;;  %v2408_v3 = vmul.f32 %v4801_v11, %v2274_v55 }
 0x233   : > { %2578 = vadd.xlane.f32.xlu0 %v2402_v58  ;;  %v1920_v61 = vpop.f32.mrf.mxu1  ;;  %v4965_v58 = vand.u32 127, %v3003_v50 }
 0x234   : > { %v2275_v63 = vmax.f32 %v1929_v60, 0.0  ;;  %v1921_v0 = vadd.f32 %v4791_v59, %v1920_v61  ;;  %v2406_v12 = vmul.f32 %v4801_v11, %v2272_v1  ;;  %v4970_v1 = vpop.permute.xlu0 %2744 }
 0x235   : > { %2580 = vadd.xlane.f32.xlu1 %v2403_v62  ;;  %v4213_v2 = vpop.f32.mrf.mxu1 }
 0x236   : > { %v1942_v4 = vadd.f32 %v4213_v2, %v4791_v59  ;;  %v2409_v5 = vmul.f32 %v4801_v11, %v2275_v63  ;;  %v2273_v7 = vmax.f32 %v1921_v0, 0.0 }
 0x237   : > { %2590 = vadd.xlane.f32.xlu0 %v2408_v3  ;;  %v1933_v8 = vpop.f32.mrf.mxu1 }
 0x238   : > { %v2278_v6 = vmax.f32 %v1942_v4, 0.0  ;;  %v1934_v9 = vadd.f32 %v4791_v59, %v1933_v8  ;;  %v2407_v15 = vmul.f32 %v4801_v11, %v2273_v7  ;;  %v4974_v7 = vshrl.u32 %v3003_v50, 7 }
 0x239   : > { %2592 = vadd.xlane.f32.xlu1 %v2409_v5  ;;  %v4214_v10 = vpop.f32.mrf.mxu1  ;;  %v3016_v8 = vadd.s32 4294967280, %v4965_v58 }
 0x23a   : > { %v1945_v13 = vadd.f32 %v4214_v10, %v4791_v59  ;;  %v2276_v18 = vmax.f32 %v1934_v9, 0.0  ;;  %v2412_v20 = vmul.f32 %v4801_v11, %v2278_v6 }
 0x23b   : > { %2586 = vadd.xlane.f32.xlu0 %v2406_v12  ;;  %v1936_v14 = vpop.f32.mrf.mxu1  ;;  %v3023_v12 = vadd.s32 4294967272, %v4965_v58 }
 0x23c   : > { %v2279_v16 = vmax.f32 %v1945_v13, 0.0  ;;  %v1937_v17 = vadd.f32 %v4791_v59, %v1936_v14  ;;  %v2410_v28 = vmul.f32 %v4801_v11, %v2276_v18 }
 0x23d   : > { %2588 = vadd.xlane.f32.xlu1 %v2407_v15  ;;  %v4217_v19 = vpop.f32.mrf.mxu1 }
 0x23e   : > { %v1958_v21 = vadd.f32 %v4217_v19, %v4791_v59  ;;  %v2413_v22 = vmul.f32 %v4801_v11, %v2279_v16  ;;  %v2277_v23 = vmax.f32 %v1937_v17, 0.0  ;;  %v3009_v16 = vadd.s32 4294967288, %v4965_v58 }
 0x23f   : > { %2598 = vadd.xlane.f32.xlu0 %v2412_v20  ;;  %v1949_v24 = vpop.f32.mrf.mxu1  ;;  %v3044_v19 = vadd.s32 4294967248, %v4965_v58  ;;  %v4984_v20 = vsub.s32 %v3016_v8, %v4974_v7 }
 0x240   : > { %v2282_v25 = vmax.f32 %v1958_v21, 0.0  ;;  %v1950_v26 = vadd.f32 %v4791_v59, %v1949_v24  ;;  %v2411_v31 = vmul.f32 %v4801_v11, %v2277_v23  ;;  %v4988_v21 = vsub.s32 %v4965_v58, %v4974_v7 }
 0x241   : > { %2600 = vadd.xlane.f32.xlu1 %v2413_v22  ;;  %v4218_v27 = vpop.f32.mrf.mxu1  ;;  %v3051_v23 = vadd.s32 4294967240, %v4965_v58 }
 0x242   : > { %v1961_v29 = vadd.f32 %v4218_v27, %v4791_v59  ;;  %v2280_v34 = vmax.f32 %v1950_v26, 0.0  ;;  %v2416_v36 = vmul.f32 %v4801_v11, %v2282_v25  ;;  %v4993_v26 = vsub.s32 %v3023_v12, %v4974_v7 }
 0x243   : > { %2594 = vadd.xlane.f32.xlu0 %v2410_v28  ;;  %v1952_v30 = vpop.f32.mrf.mxu1 }
 0x244   : > { %v2283_v32 = vmax.f32 %v1961_v29, 0.0  ;;  %v1953_v33 = vadd.f32 %v4791_v59, %v1952_v30  ;;  %v2414_v44 = vmul.f32 %v4801_v11, %v2280_v34 }
 0x245   : > { %2596 = vadd.xlane.f32.xlu1 %v2411_v31  ;;  %v4221_v35 = vpop.f32.mrf.mxu1  ;;  %v4998_v31 = vsub.s32 %v3009_v16, %v4974_v7 }
 0x246   : > { %v1974_v37 = vadd.f32 %v4221_v35, %v4791_v59  ;;  %v2417_v38 = vmul.f32 %v4801_v11, %v2283_v32  ;;  %v2281_v39 = vmax.f32 %v1953_v33, 0.0  ;;  %v5003_v35 = vsub.s32 %v3044_v19, %v4974_v7 }
 0x247   : > { %2606 = vadd.xlane.f32.xlu0 %v2416_v36  ;;  %v1965_v40 = vpop.f32.mrf.mxu1  ;;  %v3030_v36 = vadd.s32 4294967264, %v4965_v58 }
 0x248   : > { %v2286_v41 = vmax.f32 %v1974_v37, 0.0  ;;  %v1966_v42 = vadd.f32 %v4791_v59, %v1965_v40  ;;  %v2415_v47 = vmul.f32 %v4801_v11, %v2281_v39 }
 0x249   : > { %2608 = vadd.xlane.f32.xlu1 %v2417_v38  ;;  %v4222_v43 = vpop.f32.mrf.mxu1 }
 0x24a   : > { %v1977_v45 = vadd.f32 %v4222_v43, %v4791_v59  ;;  %v2284_v51 = vmax.f32 %v1966_v42, 0.0  ;;  %v2420_v53 = vmul.f32 %v4801_v11, %v2286_v41  ;;  %v5009_v41 = vsub.s32 %v3051_v23, %v4974_v7 }
 0x24b   : > { %2602 = vadd.xlane.f32.xlu0 %v2414_v44  ;;  %v1968_v46 = vpop.f32.mrf.mxu1 }
 0x24c   : > { %v2287_v48 = vmax.f32 %v1977_v45, 0.0  ;;  %v1969_v49 = vadd.f32 %v4791_v59, %v1968_v46  ;;  %v2418_v63 = vmul.f32 %v4801_v11, %v2284_v51 }
 0x24d   : > { %2604 = vadd.xlane.f32.xlu1 %v2415_v47  ;;  %v4225_v52 = vpop.f32.mrf.mxu1 }
 0x24e   : > { %v1990_v54 = vadd.f32 %v4225_v52, %v4791_v59  ;;  %v2421_v55 = vmul.f32 %v4801_v11, %v2287_v48  ;;  %v2285_v56 = vmax.f32 %v1969_v49, 0.0  ;;  %v3037_v49 = vadd.s32 4294967256, %v4965_v58 }
 0x24f   : > { %2614 = vadd.xlane.f32.xlu0 %v2420_v53  ;;  %v1981_v57 = vpop.f32.mrf.mxu1 }
 0x250   : > { %v2290_v60 = vmax.f32 %v1990_v54, 0.0  ;;  %v1982_v61 = vadd.f32 %v4791_v59, %v1981_v57  ;;  %v2419_v3 = vmul.f32 %v4801_v11, %v2285_v56  ;;  %v5020_v54 = vsub.s32 %v3030_v36, %v4974_v7 }
 0x251   : > { %2616 = vadd.xlane.f32.xlu1 %v2421_v55  ;;  %v4226_v62 = vpop.f32.mrf.mxu1  ;;  %v3072_v57 = vadd.s32 4294967216, %v4965_v58 }
 0x252   : > { %v1993_v0 = vadd.f32 %v4226_v62, %v4791_v59  ;;  %v2288_v6 = vmax.f32 %v1982_v61, 0.0  ;;  %v2424_v10 = vmul.f32 %v4801_v11, %v2290_v60  ;;  %v3079_v60 = vadd.s32 4294967208, %v4965_v58 }
 0x253   : > { %2610 = vadd.xlane.f32.xlu0 %v2418_v63  ;;  %v1984_v2 = vpop.f32.mrf.mxu1  ;;  %v5051_v23 = vsub.s32 %v3072_v57, %v4974_v7 }
 0x254   : > { %v2291_v4 = vmax.f32 %v1993_v0, 0.0  ;;  %v1985_v5 = vadd.f32 %v4791_v59, %v1984_v2  ;;  %v2422_v28 = vmul.f32 %v4801_v11, %v2288_v6  ;;  %v5036_v2 = vld [vmem:[%s5649_s5] ss:$0 sm:$0xff]  ;;  %v5042_v6 = vsub.s32 %v3037_v49, %v4974_v7 }
 0x255   : > { %2612 = vadd.xlane.f32.xlu1 %v2419_v3  ;;  %v4229_v9 = vpop.f32.mrf.mxu1 }
 0x256   : > { %v2487_v13 = vpop.xlane.xlu1 %2486  ;;  %v2006_v14 = vadd.f32 %v4229_v9, %v4791_v59  ;;  %v2425_v15 = vmul.f32 %v4801_v11, %v2291_v4  ;;  %v2289_v17 = vmax.f32 %v1985_v5, 0.0 }
 0x257   : > { %2622 = vadd.xlane.f32.xlu0 %v2424_v10  ;;  %v1997_v18 = vpop.f32.mrf.mxu1  ;;  %v2749_v37 = vadd.f32 %v4970_v1, %v2487_v13 }
 0x258   : > { %v2483_v22 = vpop.xlane.xlu0 %2482  ;;  %v2294_v24 = vmax.f32 %v2006_v14, 0.0  ;;  %v1998_v25 = vadd.f32 %v4791_v59, %v1997_v18  ;;  %v2423_v34 = vmul.f32 %v4801_v11, %v2289_v17  ;;  %v3058_v17 = vadd.s32 4294967232, %v4965_v58 }
 0x259   : > { %2624 = vadd.xlane.f32.xlu1 %v2425_v15  ;;  %v4230_v27 = vpop.f32.mrf.mxu1  ;;  %v2747_v32 = vadd.f32 %v4970_v1, %v2483_v22  ;;  %v3020_v55 = vrot.slane %v2749_v37, %v4984_v20 }
 0x25a   : > { %v2489_v29 = vpop.xlane.xlu1 %2488  ;;  %v2009_v30 = vadd.f32 %v4230_v27, %v4791_v59  ;;  %v2292_v42 = vmax.f32 %v1998_v25, 0.0  ;;  %v2428_v46 = vmul.f32 %v4801_v11, %v2294_v24  ;;  %v5054_v24 = vsub.s32 %v3079_v60, %v4974_v7 }
 0x25b   : > { %2618 = vadd.xlane.f32.xlu0 %v2422_v28  ;;  %v2000_v33 = vpop.f32.mrf.mxu1  ;;  %v2750_v43 = vadd.f32 %v4970_v1, %v2489_v29  ;;  %v3008_v50 = vrot.slane %v2747_v32, %v4988_v21 }
 0x25c   : > { %v2295_v38 = vmax.f32 %v2009_v30, 0.0  ;;  %v2001_v39 = vadd.f32 %v4791_v59, %v2000_v33  ;;  %v2485_v40 = vpop.xlane.xlu0 %2484  ;;  %v2426_v3 = vmul.f32 %v5036_v2, %v2292_v42  ;;  %v3065_v30 = vadd.s32 4294967224, %v4965_v58 }
 0x25d   : > { %v2748_v44 = vadd.f32 %v4970_v1, %v2485_v40  ;;  %2620 = vadd.xlane.f32.xlu1 %v2423_v34  ;;  %v4233_v45 = vpop.f32.mrf.mxu1  ;;  %v3027_v61 = vrot.slane %v2750_v43, %v4993_v26  ;;  %v5065_v40 = vsub.s32 %v3058_v17, %v4974_v7 }
 0x25e   : > { %v2022_v47 = vadd.f32 %v4233_v45, %v4791_v59  ;;  %v2429_v48 = vmul.f32 %v4801_v11, %v2295_v38  ;;  %v2293_v51 = vmax.f32 %v2001_v39, 0.0  ;;  %v5026_v59 = vld [vmem:[%s5648_s4] ss:$0 sm:$0xff] }
 0x25f   : > { %v3013_v52 = vrot.slane %v2748_v44, %v4998_v31  ;;  %2630 = vadd.xlane.f32.xlu0 %v2428_v46  ;;  %v2013_v53 = vpop.f32.mrf.mxu1 }
 0x260   : > { %v2014_v11 = vadd.f32 %v5026_v59, %v2013_v53  ;;  %v2495_v56 = vpop.xlane.xlu0 %2494  ;;  %v2298_v63 = vmax.f32 %v2022_v47, 0.0  ;;  %v2427_v12 = vmul.f32 %v5036_v2, %v2293_v51 }
 0x261   : > { %v3015_v62 = vsel %vm3014_vm0, %v3013_v52, %v3008_v50  ;;  %2632 = vadd.xlane.f32.xlu1 %v2429_v48  ;;  %v4234_v0 = vpop.f32.mrf.mxu1  ;;  %v2753_v25 = vadd.f32 %v4970_v1, %v2495_v56  ;;  %v5073_v50 = vsub.s32 %v3065_v30, %v4974_v7 }
 0x262   : > { %v3022_v4 = vsel %vm3021_vm1, %v3020_v55, %v3015_v62  ;;  %v2497_v5 = vpop.xlane.xlu1 %2496  ;;  %v2025_v8 = vadd.f32 %v5026_v59, %v4234_v0  ;;  %v2296_v13 = vmax.f32 %v2014_v11, 0.0  ;;  %v2432_v22 = vmul.f32 %v5036_v2, %v2298_v63 }
 0x263   : > { %2626 = vadd.xlane.f32.xlu0 %v2426_v3  ;;  %v2016_v9 = vpop.f32.mrf.mxu1  ;;  %v3029_v10 = vsel %vm3028_vm2, %v3027_v61, %v3022_v4  ;;  %v2754_v32 = vadd.f32 %v4970_v1, %v2497_v5  ;;  %v3048_v47 = vrot.slane %v2753_v25, %v5003_v35  ;;  %v3100_v11 = vadd.s32 4294967184, %v4965_v58 }
 0x264   : > { %v2299_v14 = vmax.f32 %v2025_v8, 0.0  ;;  %v2017_v15 = vadd.f32 %v5026_v59, %v2016_v9  ;;  %v2491_v16 = vpop.xlane.xlu0 %2490  ;;  %v2430_v39 = vmul.f32 %v5036_v2, %v2296_v13  ;;  %v3107_v62 = vadd.s32 4294967176, %v4965_v58 }
 0x265   : > { %v2751_v18 = vadd.f32 %v4970_v1, %v2491_v16  ;;  %2628 = vadd.xlane.f32.xlu1 %v2427_v12  ;;  %v4237_v19 = vpop.f32.mrf.mxu1  ;;  %v3055_v51 = vrot.slane %v2754_v32, %v5009_v41  ;;  %v3086_v13 = vadd.s32 4294967200, %v4965_v58  ;;  %v3093_v25 = vadd.s32 4294967192, %v4965_v58 }
 0x266   : > { %v2038_v27 = vadd.f32 %v5026_v59, %v4237_v19  ;;  %v2493_v28 = vpop.xlane.xlu1 %2492  ;;  %v2433_v29 = vmul.f32 %v5036_v2, %v2299_v14  ;;  %v2297_v33 = vmax.f32 %v2017_v15, 0.0 }
 0x267   : > { %v3034_v34 = vrot.slane %v2751_v18, %v5020_v54  ;;  %v2752_v36 = vadd.f32 %v4970_v1, %v2493_v28  ;;  %2638 = vadd.xlane.f32.xlu0 %v2432_v22  ;;  %v2029_v37 = vpop.f32.mrf.mxu1 }
 0x268   : > { %v2503_v38 = vpop.xlane.xlu0 %2502  ;;  %v2302_v43 = vmax.f32 %v2038_v27, 0.0  ;;  %v2030_v45 = vadd.f32 %v5026_v59, %v2029_v37  ;;  %v2431_v55 = vmul.f32 %v5036_v2, %v2297_v33  ;;  %v5103_v37 = vsub.s32 %v3107_v62, %v4974_v7 }
 0x269   : > { %v3036_v42 = vsel %vm3035_vm3, %v3034_v34, %v3029_v10  ;;  %v3041_v44 = vrot.slane %v2752_v36, %v5042_v6  ;;  %2640 = vadd.xlane.f32.xlu1 %v2433_v29  ;;  %v4238_v46 = vpop.f32.mrf.mxu1  ;;  %v2757_v8 = vadd.f32 %v4970_v1, %v2503_v38  ;;  %v5099_v34 = vsub.s32 %v3100_v11, %v4974_v7 }
 0x26a   : > { %v2041_v48 = vadd.f32 %v5026_v59, %v4238_v46  ;;  %v2505_v49 = vpop.xlane.xlu1 %2504  ;;  %v2300_v63 = vmax.f32 %v2030_v45, 0.0  ;;  %v2436_v5 = vmul.f32 %v5036_v2, %v2302_v43  ;;  %v5108_v43 = vsub.s32 %v3086_v13, %v4974_v7 }
 0x26b   : > { %v3043_v52 = vsel %vm3042_vm4, %v3041_v44, %v3036_v42  ;;  %2634 = vadd.xlane.f32.xlu0 %v2430_v39  ;;  %v2032_v53 = vpop.f32.mrf.mxu1  ;;  %v2758_v14 = vadd.f32 %v4970_v1, %v2505_v49  ;;  %v3076_v33 = vrot.slane %v2757_v8, %v5051_v23 }
 0x26c   : > { %v3050_v56 = vsel %vm3049_vm5, %v3048_v47, %v3043_v52  ;;  %v2303_v57 = vmax.f32 %v2041_v48, 0.0  ;;  %v2033_v60 = vadd.f32 %v5026_v59, %v2032_v53  ;;  %v2499_v61 = vpop.xlane.xlu0 %2498  ;;  %v2434_v32 = vmul.f32 %v5036_v2, %v2300_v63 }
 0x26d   : > { %v3057_v0 = vsel %vm3056_vm6, %v3055_v51, %v3050_v56  ;;  %v2755_v3 = vadd.f32 %v4970_v1, %v2499_v61  ;;  %2636 = vadd.xlane.f32.xlu1 %v2431_v55  ;;  %v4241_v4 = vpop.f32.mrf.mxu1  ;;  %v3083_v38 = vrot.slane %v2758_v14, %v5054_v24  ;;  %v5116_v55 = vsub.s32 %v3093_v25, %v4974_v7 }
 0x26e   : > { %v2054_v9 = vadd.f32 %v5026_v59, %v4241_v4  ;;  %v2501_v10 = vpop.xlane.xlu1 %2500  ;;  %v2437_v12 = vmul.f32 %v5036_v2, %v2303_v57  ;;  %v2301_v15 = vmax.f32 %v2033_v60, 0.0 }
 0x26f   : > { %v3062_v16 = vrot.slane %v2755_v3, %v5065_v40  ;;  %v2756_v17 = vadd.f32 %v4970_v1, %v2501_v10  ;;  %2646 = vadd.xlane.f32.xlu0 %v2436_v5  ;;  %v2045_v18 = vpop.f32.mrf.mxu1 }
 0x270   : > { %v2046_v19 = vadd.f32 %v5026_v59, %v2045_v18  ;;  %v2511_v22 = vpop.xlane.xlu0 %2510  ;;  %v2306_v28 = vmax.f32 %v2054_v9, 0.0  ;;  %v2435_v44 = vmul.f32 %v5036_v2, %v2301_v15 }
 0x271   : > { %v3064_v27 = vsel %vm3063_vm7, %v3062_v16, %v3057_v0  ;;  %v3069_v29 = vrot.slane %v2756_v17, %v5073_v50  ;;  %2648 = vadd.xlane.f32.xlu1 %v2437_v12  ;;  %v4242_v30 = vpop.f32.mrf.mxu1  ;;  %v2761_v56 = vadd.f32 %v4970_v1, %v2511_v22 }
 0x272   : > { %v2057_v36 = vadd.f32 %v5026_v59, %v4242_v30  ;;  %v2513_v58 = vpop.xlane.xlu1 %2512  ;;  %v2304_v46 = vmax.f32 %v2046_v19, 0.0  ;;  %v2440_v11 = vmul.f32 %v5036_v2, %v2306_v28 }
 0x273   : > { %v3071_v39 = vsel %vm3070_vm8, %v3069_v29, %v3064_v27  ;;  %2642 = vadd.xlane.f32.xlu0 %v2434_v32  ;;  %v2048_v42 = vpop.f32.mrf.mxu1  ;;  %v2762_v62 = vadd.f32 %v4970_v1, %v2513_v58  ;;  %v3104_v14 = vrot.slane %v2761_v56, %v5099_v34 }
 0x274   : > { %v3078_v45 = vsel %vm3077_vm9, %v3076_v33, %v3071_v39  ;;  %v2307_v47 = vmax.f32 %v2057_v36, 0.0  ;;  %v2049_v48 = vadd.f32 %v5026_v59, %v2048_v42  ;;  %v2507_v49 = vpop.xlane.xlu0 %2506  ;;  %v2438_v5 = vmul.f32 %v5036_v2, %v2304_v46 }
 0x275   : > { %v3085_v51 = vsel %vm3084_vm10, %v3083_v38, %v3078_v45  ;;  %v2759_v52 = vadd.f32 %v4970_v1, %v2507_v49  ;;  %2644 = vadd.xlane.f32.xlu1 %v2435_v44  ;;  %v4245_v53 = vpop.f32.mrf.mxu1  ;;  %v3111_v17 = vrot.slane %v2762_v62, %v5103_v37 }
 0x276   : > { %v2070_v57 = vadd.f32 %v5026_v59, %v4245_v53  ;;  %v2509_v60 = vpop.xlane.xlu1 %2508  ;;  %v2441_v61 = vmul.f32 %v5036_v2, %v2307_v47  ;;  %v2305_v63 = vmax.f32 %v2049_v48, 0.0 }
 0x277   : > { %v3090_v0 = vrot.slane %v2759_v52, %v5108_v43  ;;  %v2760_v3 = vadd.f32 %v4970_v1, %v2509_v60  ;;  %2654 = vadd.xlane.f32.xlu0 %v2440_v11  ;;  %v2061_v7 = vpop.f32.mrf.mxu1 }
 0x278   : > { %v2519_v4 = vpop.xlane.xlu0 %2518  ;;  %v2310_v9 = vmax.f32 %v2070_v57, 0.0  ;;  %v2062_v12 = vadd.f32 %v5026_v59, %v2061_v7  ;;  %v2439_v22 = vmul.f32 %v5036_v2, %v2305_v63 }
 0x279   : > { %v3092_v8 = vsel %vm3091_vm11, %v3090_v0, %v3085_v51  ;;  %v3097_v10 = vrot.slane %v2760_v3, %v5116_v55  ;;  %2656 = vadd.xlane.f32.xlu1 %v2441_v61  ;;  %v4246_v13 = vpop.f32.mrf.mxu1  ;;  %v2765_v38 = vadd.f32 %v4970_v1, %v2519_v4 }
 0x27a   : > { %v2073_v15 = vadd.f32 %v5026_v59, %v4246_v13  ;;  %v2521_v16 = vpop.xlane.xlu1 %2520  ;;  %v2308_v32 = vmax.f32 %v2062_v12, 0.0  ;;  %v2444_v58 = vmul.f32 %v5036_v2, %v2310_v9 }
 0x27b   : > { %v3099_v18 = vsel %vm3098_vm12, %v3097_v10, %v3092_v8  ;;  %2650 = vadd.xlane.f32.xlu0 %v2438_v5  ;;  %v2064_v19 = vpop.f32.mrf.mxu1  ;;  %v2766_v45 = vadd.f32 %v4970_v1, %v2521_v16  ;;  %v3126_v57 = vrot.slane %v2765_v38, %v4984_v20 }
 0x27c   : > { %v3106_v25 = vsel %vm3105_vm13, %v3104_v14, %v3099_v18  ;;  %v2311_v27 = vmax.f32 %v2073_v15, 0.0  ;;  %v2065_v28 = vadd.f32 %v5026_v59, %v2064_v19  ;;  %v2515_v29 = vpop.xlane.xlu0 %2514  ;;  %v2442_v56 = vmul.f32 %v5036_v2, %v2308_v32 }
 0x27d   : > { %v5137_v30 = vsel %vm3112_vm14, %v3111_v17, %v3106_v25  ;;  %v2763_v33 = vadd.f32 %v4970_v1, %v2515_v29  ;;  %2652 = vadd.xlane.f32.xlu1 %v2439_v22  ;;  %v4249_v36 = vpop.f32.mrf.mxu1  ;;  %v3131_v63 = vrot.slane %v2766_v45, %v4993_v26 }
 0x27e   : > { %v2086_v39 = vadd.f32 %v5026_v59, %v4249_v36  ;;  %v2517_v42 = vpop.xlane.xlu1 %2516  ;;  %v2445_v44 = vmul.f32 %v5036_v2, %v2311_v27  ;;  %v2309_v46 = vmax.f32 %v2065_v28, 0.0 }
 0x27f   : > { %v2764_v47 = vadd.f32 %v4970_v1, %v2517_v42  ;;  %2662 = vadd.xlane.f32.xlu0 %v2444_v58  ;;  %v2077_v48 = vpop.f32.mrf.mxu1  ;;  %v3117_v52 = vrot.slane %v2763_v33, %v4988_v21 }
 0x280   : > { %v2078_v49 = vadd.f32 %v5026_v59, %v2077_v48  ;;  %v2527_v51 = vpop.xlane.xlu0 %2526  ;;  %v2314_v60 = vmax.f32 %v2086_v39, 0.0  ;;  %v2443_v7 = vmul.f32 %v5036_v2, %v2309_v46 }
 0x281   : > { %v3121_v53 = vrot.slane %v2764_v47, %v4998_v31  ;;  %2664 = vadd.xlane.f32.xlu1 %v2445_v44  ;;  %v5149_v11 = vpop.f32.mrf.mxu1  ;;  %v2769_v14 = vadd.f32 %v4970_v1, %v2527_v51 }
 0x282   : > { %v2312_v61 = vmax.f32 %v2078_v49, 0.0  ;;  %v2529_v62 = vpop.xlane.xlu1 %2528  ;;  %v2448_v17 = vmul.f32 %v5036_v2, %v2314_v60 }
 0x283   : > { %v3122_v0 = vsel %vm3014_vm0, %v3121_v53, %v3117_v52  ;;  %2658 = vadd.xlane.f32.xlu0 %v2442_v56  ;;  %v2080_v3 = vpop.f32.mrf.mxu1  ;;  %v2770_v15 = vadd.f32 %v4970_v1, %v2529_v62  ;;  %v3146_v36 = vrot.slane %v2769_v14, %v5003_v35 }
 0x284   : > { %v3127_v4 = vsel %vm3021_vm1, %v3126_v57, %v3122_v0  ;;  %v2081_v5 = vadd.f32 %v5026_v59, %v2080_v3  ;;  %v2523_v8 = vpop.xlane.xlu0 %2522  ;;  %v2446_v9 = vmul.f32 %v5036_v2, %v2312_v61 }
 0x285   : > { %v3132_v10 = vsel %vm3028_vm2, %v3131_v63, %v3127_v4  ;;  %v2767_v12 = vadd.f32 %v4970_v1, %v2523_v8  ;;  %2660 = vadd.xlane.f32.xlu1 %v2443_v7  ;;  %v4253_v13 = vpop.f32.mrf.mxu1  ;;  %v3151_v42 = vrot.slane %v2770_v15, %v5009_v41 }
 0x286   : > { %v2525_v16 = vpop.xlane.xlu1 %2524  ;;  %v2313_v18 = vmax.f32 %v2081_v5, 0.0  ;;  %v2102_v22 = vadd.f32 %v5026_v59, %v4253_v13 }
 0x287   : > { %v3136_v19 = vrot.slane %v2767_v12, %v5020_v54  ;;  %v2768_v25 = vadd.f32 %v4970_v1, %v2525_v16  ;;  %2666 = vadd.xlane.f32.xlu0 %v2446_v9  ;;  %v2093_v27 = vpop.f32.mrf.mxu1 }
 0x288   : > { %v2535_v28 = vpop.xlane.xlu0 %2534  ;;  %v2094_v58 = vadd.f32 %v5026_v59, %v2093_v27  ;;  %v2318_v44 = vmax.f32 %v2102_v22, 0.0  ;;  %v2447_v47 = vmul.f32 %v5036_v2, %v2313_v18 }
 0x289   : > { %v3137_v29 = vsel %vm3035_vm3, %v3136_v19, %v3132_v10  ;;  %v3141_v32 = vrot.slane %v2768_v25, %v5042_v6  ;;  %2670 = vadd.xlane.f32.xlu1 %v2448_v17  ;;  %v4254_v33 = vpop.f32.mrf.mxu1  ;;  %v2773_v53 = vadd.f32 %v4970_v1, %v2535_v28 }
 0x28a   : > { %v2105_v38 = vadd.f32 %v5026_v59, %v4254_v33  ;;  %v2537_v39 = vpop.xlane.xlu1 %2536  ;;  %v2316_v61 = vmax.f32 %v2094_v58, 0.0  ;;  %v2452_v9 = vmul.f32 %v5036_v2, %v2318_v44 }
 0x28b   : > { %v3142_v45 = vsel %vm3042_vm4, %v3141_v32, %v3137_v29  ;;  %v2096_v46 = vpop.f32.mrf.mxu1  ;;  %v2774_v7 = vadd.f32 %v4970_v1, %v2537_v39  ;;  %v3166_v15 = vrot.slane %v2773_v53, %v5051_v23 }
 0x28c   : > { %v3147_v48 = vsel %vm3049_vm5, %v3146_v36, %v3142_v45  ;;  %v2319_v49 = vmax.f32 %v2105_v38, 0.0  ;;  %v2097_v51 = vadd.f32 %v5026_v59, %v2096_v46  ;;  %v2531_v52 = vpop.xlane.xlu0 %2530  ;;  %v2450_v22 = vmul.f32 %v5036_v2, %v2316_v61 }
 0x28d   : > { %v3152_v56 = vsel %vm3056_vm6, %v3151_v42, %v3147_v48  ;;  %v2771_v57 = vadd.f32 %v4970_v1, %v2531_v52  ;;  %2668 = vadd.xlane.f32.xlu1 %v2447_v47  ;;  %v4257_v60 = vpop.f32.mrf.mxu1  ;;  %v3171_v25 = vrot.slane %v2774_v7, %v5054_v24 }
 0x28e   : > { %v2317_v62 = vmax.f32 %v2097_v51, 0.0  ;;  %v2118_v63 = vadd.f32 %v5026_v59, %v4257_v60  ;;  %v2533_v0 = vpop.xlane.xlu1 %2532  ;;  %v2453_v3 = vmul.f32 %v5036_v2, %v2319_v49 }
 0x28f   : > { %v3156_v4 = vrot.slane %v2771_v57, %v5065_v40  ;;  %v2772_v5 = vadd.f32 %v4970_v1, %v2533_v0  ;;  %v2109_v8 = vpop.f32.mrf.mxu1 }
 0x290   : > { %v2543_v10 = vpop.xlane.xlu0 %2542  ;;  %2680 = vadd.xlane.f32.xlu0 %v2453_v3  ;;  %v2451_v16 = vmul.f32 %v5036_v2, %v2317_v62  ;;  %v2322_v17 = vmax.f32 %v2118_v63, 0.0  ;;  %v2110_v18 = vadd.f32 %v5026_v59, %v2109_v8 }
 0x291   : > { %v3157_v12 = vsel %vm3063_vm7, %v3156_v4, %v3152_v56  ;;  %v3161_v13 = vrot.slane %v2772_v5, %v5073_v50  ;;  %2678 = vadd.xlane.f32.xlu1 %v2452_v9  ;;  %v4258_v14 = vpop.f32.mrf.mxu1  ;;  %v2777_v42 = vadd.f32 %v4970_v1, %v2543_v10 }
 0x292   : > { %v2545_v19 = vpop.xlane.xlu1 %2544  ;;  %v2456_v38 = vmul.f32 %v5036_v2, %v2322_v17  ;;  %v2320_v39 = vmax.f32 %v2110_v18, 0.0  ;;  %v2121_v45 = vadd.f32 %v5026_v59, %v4258_v14 }
 0x293   : > { %v3162_v27 = vsel %vm3070_vm8, %v3161_v13, %v3157_v12  ;;  %v2112_v28 = vpop.f32.mrf.mxu1  ;;  %v2778_v46 = vadd.f32 %v4970_v1, %v2545_v19  ;;  %v3186_v60 = vrot.slane %v2777_v42, %v5099_v34 }
 0x294   : > { %v3167_v29 = vsel %vm3077_vm9, %v3166_v15, %v3162_v27  ;;  %v2539_v32 = vpop.xlane.xlu0 %2538  ;;  %2676 = vadd.xlane.f32.xlu0 %v2451_v16  ;;  %v2454_v57 = vmul.f32 %v5036_v2, %v2320_v39  ;;  %v2323_v62 = vmax.f32 %v2121_v45, 0.0  ;;  %v2113_v0 = vadd.f32 %v5026_v59, %v2112_v28 }
 0x295   : > { %v3172_v33 = vsel %vm3084_vm10, %v3171_v25, %v3167_v29  ;;  %v2775_v36 = vadd.f32 %v4970_v1, %v2539_v32  ;;  %2674 = vadd.xlane.f32.xlu1 %v2450_v22  ;;  %v4261_v58 = vpop.f32.mrf.mxu1  ;;  %v3191_v63 = vrot.slane %v2778_v46, %v5103_v37 }
 0x296   : > { %v2541_v44 = vpop.xlane.xlu1 %2540  ;;  %v2134_v12 = vadd.f32 %v5026_v59, %v4261_v58  ;;  %v2457_v16 = vmul.f32 %v5036_v2, %v2323_v62  ;;  %v2321_v17 = vmax.f32 %v2113_v0, 0.0 }
 0x297   : > { %v3176_v47 = vrot.slane %v2775_v36, %v5108_v43  ;;  %v2776_v48 = vadd.f32 %v4970_v1, %v2541_v44  ;;  %v2125_v49 = vpop.f32.mrf.mxu1 }
 0x298   : > { %v2551_v51 = vpop.xlane.xlu0 %2550  ;;  %v2455_v36 = vmul.f32 %v5036_v2, %v2321_v17  ;;  %v2126_v58 = vadd.f32 %v5026_v59, %v2125_v49 }
 0x299   : > { %v3177_v52 = vsel %vm3091_vm11, %v3176_v47, %v3172_v33  ;;  %v3181_v53 = vrot.slane %v2776_v48, %v5116_v55  ;;  %2686 = vadd.xlane.f32.xlu1 %v2456_v38  ;;  %v4262_v56 = vpop.f32.mrf.mxu1  ;;  %v2781_v14 = vadd.f32 %v4970_v1, %v2551_v51 }
 0x29a   : > { %v2553_v61 = vpop.xlane.xlu1 %2552  ;;  %v2137_v49 = vadd.f32 %v5026_v59, %v4262_v56 }
 0x29b   : > { %v3182_v3 = vsel %vm3098_vm12, %v3181_v53, %v3177_v52  ;;  %v2128_v7 = vpop.f32.mrf.mxu1  ;;  %v2782_v18 = vadd.f32 %v4970_v1, %v2553_v61  ;;  %v3205_v32 = vrot.slane %v2781_v14, %v4984_v20  ;;  %v2324_v61 = vmax.f32 %v2126_v58, 0.0 }
 0x29c   : > { %v3187_v4 = vsel %vm3105_vm13, %v3186_v60, %v3182_v3  ;;  %v2547_v5 = vpop.xlane.xlu0 %2546 }
 0x29d   : > { %v3192_v8 = vsel %vm3112_vm14, %v3191_v63, %v3187_v4  ;;  %v2779_v9 = vadd.f32 %v4970_v1, %v2547_v5  ;;  %2682 = vadd.xlane.f32.xlu1 %v2454_v57  ;;  %v5213_v10 = vpop.f32.mrf.mxu1  ;;  %v3210_v38 = vrot.slane %v2782_v18, %v4993_v26  ;;  %v2089_v4 = vadd.f32 %v5026_v59, %v5149_v11 }
 0x29e   : > { %v5217_v13 = vsel %vm3667_vm15, %v3192_v8, %v5137_v30  ;;  %v2549_v15 = vpop.xlane.xlu1 %2548  ;;  %v2326_v30 = vmax.f32 %v2134_v12, 0.0  ;;  %v2458_v11 = vmul.f32 %v5036_v2, %v2324_v61  ;;  %vm3669_vm15 = vcmask 1042434  }
 0x29f   : > { %v2780_v19 = vadd.f32 %v4970_v1, %v2549_v15  ;;  %v2141_v22 = vpop.f32.mrf.mxu1  ;;  %v3196_v27 = vrot.slane %v2779_v9, %v4988_v21  ;;  %v2327_v15 = vmax.f32 %v2137_v49, 0.0 }
 0x2a0   : > { %v2559_v25 = vpop.xlane.xlu0 %2558  ;;  %v2460_v52 = vmul.f32 %v5036_v2, %v2326_v30  ;;  %v2315_v30 = vmax.f32 %v2089_v4, 0.0 }
 0x2a1   : > { %v3200_v28 = vrot.slane %v2780_v19, %v4998_v31  ;;  %2688 = vadd.xlane.f32.xlu1 %v2457_v16  ;;  %v5225_v29 = vpop.f32.mrf.mxu1  ;;  %v2785_v53 = vadd.f32 %v4970_v1, %v2559_v25  ;;  %v2129_v19 = vadd.f32 %v5026_v59, %v2128_v7  ;;  %v2461_v7 = vmul.f32 %v5036_v2, %v2327_v15 }
 0x2a2   : > { %v2561_v33 = vpop.xlane.xlu1 %2560 }
 0x2a3   : > { %v3201_v39 = vsel %vm3014_vm0, %v3200_v28, %v3196_v27  ;;  %v2144_v42 = vpop.f32.mrf.mxu1  ;;  %v2786_v62 = vadd.f32 %v4970_v1, %v2561_v33  ;;  %v3225_v16 = vrot.slane %v2785_v53, %v5003_v35  ;;  %v2449_v53 = vmul.f32 %v5036_v2, %v2315_v30 }
 0x2a4   : > { %v3206_v44 = vsel %vm3021_vm1, %v3205_v32, %v3201_v39  ;;  %v2145_v45 = vadd.f32 %v5026_v59, %v2144_v42  ;;  %v2555_v46 = vpop.xlane.xlu0 %2554  ;;  %v2142_v42 = vadd.f32 %v5026_v59, %v2141_v22 }
 0x2a5   : > { %v3211_v47 = vsel %vm3028_vm2, %v3210_v38, %v3206_v44  ;;  %v2783_v48 = vadd.f32 %v4970_v1, %v2555_v46  ;;  %2684 = vadd.xlane.f32.xlu1 %v2455_v36  ;;  %v4269_v51 = vpop.f32.mrf.mxu1  ;;  %v3230_v25 = vrot.slane %v2786_v62, %v5009_v41  ;;  %v2325_v46 = vmax.f32 %v2129_v19, 0.0 }
 0x2a6   : > { %v2329_v57 = vmax.f32 %v2145_v45, 0.0  ;;  %v2557_v60 = vpop.xlane.xlu1 %2556  ;;  %v2328_v62 = vmax.f32 %v2142_v42, 0.0  ;;  %v2166_v4 = vadd.f32 %v5026_v59, %v4269_v51 }
 0x2a7   : > { %v3215_v63 = vrot.slane %v2783_v48, %v5020_v54  ;;  %v2784_v0 = vadd.f32 %v4970_v1, %v2557_v60  ;;  %v2157_v3 = vpop.f32.mrf.mxu1 }
 0x2a8   : > { %v2463_v5 = vmul.f32 %v5036_v2, %v2329_v57  ;;  %v2158_v8 = vadd.f32 %v5026_v59, %v2157_v3  ;;  %v2567_v56 = vpop.xlane.xlu0 %2566  ;;  %v2459_v3 = vmul.f32 %v5036_v2, %v2325_v46  ;;  %v2462_v51 = vmul.f32 %v5036_v2, %v2328_v62 }
 0x2a9   : > { %v3216_v9 = vsel %vm3035_vm3, %v3215_v63, %v3211_v47  ;;  %v3220_v12 = vrot.slane %v2784_v0, %v5042_v6  ;;  %2694 = vadd.xlane.f32.xlu1 %v2460_v52  ;;  %v5248_v14 = vpop.f32.mrf.mxu1  ;;  %v2789_v44 = vadd.f32 %v4970_v1, %v2567_v56 }
 0x2aa   : > { %v2332_v17 = vmax.f32 %v2158_v8, 0.0  ;;  %v2569_v18 = vpop.xlane.xlu1 %2568  ;;  %2700 = vadd.xlane.f32.xlu0 %v2463_v5 }
 0x2ab   : > { %v3221_v27 = vsel %vm3042_vm4, %v3220_v12, %v3216_v9  ;;  %v5255_v28 = vpop.f32.mrf.mxu1  ;;  %v2790_v47 = vadd.f32 %v4970_v1, %v2569_v18  ;;  %v3245_v63 = vrot.slane %v2789_v44, %v5051_v23  ;;  %v2150_v18 = vadd.f32 %v5026_v59, %v5213_v10 }
 0x2ac   : > { %v3226_v32 = vsel %vm3049_vm5, %v3225_v16, %v3221_v27  ;;  %v2466_v33 = vmul.f32 %v5036_v2, %v2332_v17  ;;  %v2563_v36 = vpop.xlane.xlu0 %2562 }
 0x2ad   : > { %v3231_v58 = vsel %vm3056_vm6, %v3230_v25, %v3226_v32  ;;  %v2787_v38 = vadd.f32 %v4970_v1, %v2563_v36  ;;  %2690 = vadd.xlane.f32.xlu1 %v2458_v11  ;;  %v5261_v39 = vpop.f32.mrf.mxu1  ;;  %v3250_v5 = vrot.slane %v2790_v47, %v5054_v24  ;;  %v2334_v25 = vmax.f32 %v2166_v4, 0.0 }
 0x2ae   : > { %v2565_v45 = vpop.xlane.xlu1 %2564  ;;  %2706 = vadd.xlane.f32.xlu0 %v2466_v33  ;;  %v2330_v42 = vmax.f32 %v2150_v18, 0.0  ;;  %v2153_v47 = vadd.f32 %v5026_v59, %v5225_v29 }
 0x2af   : > { %v3235_v48 = vrot.slane %v2787_v38, %v5065_v40  ;;  %v2788_v52 = vadd.f32 %v4970_v1, %v2565_v45  ;;  %v5269_v49 = vpop.f32.mrf.mxu1 }
 0x2b0   : > { %v2575_v57 = vpop.xlane.xlu0 %2574 }
 0x2b1   : > { %v3236_v60 = vsel %vm3063_vm7, %v3235_v48, %v3231_v58  ;;  %v3240_v22 = vrot.slane %v2788_v52, %v5073_v50  ;;  %2696 = vadd.xlane.f32.xlu1 %v2461_v7  ;;  %v5274_v61 = vpop.f32.mrf.mxu1  ;;  %v2793_v11 = vadd.f32 %v4970_v1, %v2575_v57  ;;  %v2468_v48 = vmul.f32 %v5036_v2, %v2334_v25 }
 0x2b2   : > { %v2577_v0 = vpop.xlane.xlu1 %2576  ;;  %2672 = vadd.xlane.f32.xlu0 %v2449_v53 }
 0x2b3   : > { %v3241_v8 = vsel %vm3070_vm8, %v3240_v22, %v3236_v60  ;;  %v5281_v56 = vpop.f32.mrf.mxu1  ;;  %v2794_v27 = vadd.f32 %v4970_v1, %v2577_v0  ;;  %v3265_v44 = vrot.slane %v2793_v11, %v5099_v34 }
 0x2b4   : > { %v3246_v9 = vsel %vm3077_vm9, %v3245_v63, %v3241_v8  ;;  %v2571_v12 = vpop.xlane.xlu0 %2570  ;;  %v2169_v63 = vadd.f32 %v5026_v59, %v5248_v14 }
 0x2b5   : > { %v3251_v15 = vsel %vm3084_vm10, %v3250_v5, %v3246_v9  ;;  %v2791_v16 = vadd.f32 %v4970_v1, %v2571_v12  ;;  %2692 = vadd.xlane.f32.xlu1 %v2459_v3  ;;  %v5286_v17 = vpop.f32.mrf.mxu1  ;;  %v3270_v52 = vrot.slane %v2794_v27, %v5103_v37  ;;  %v2464_v9 = vmul.f32 %v5036_v2, %v2330_v42 }
 0x2b6   : > { %v2573_v19 = vpop.xlane.xlu1 %2572  ;;  %v2331_v12 = vmax.f32 %v2153_v47, 0.0 }
 0x2b7   : > { %v3255_v30 = vrot.slane %v2791_v16, %v5108_v43  ;;  %v2792_v32 = vadd.f32 %v4970_v1, %v2573_v19  ;;  %v2189_v33 = vpop.f32.mrf.mxu1 }
 0x2b8   : > { %v2190_v36 = vadd.f32 %v5026_v59, %v2189_v33  ;;  %v2583_v58 = vpop.xlane.xlu0 %2582  ;;  %v2161_v33 = vadd.f32 %v5026_v59, %v5255_v28  ;;  %v2182_v28 = vadd.f32 %v5026_v59, %v5261_v39 }
 0x2b9   : > { %v3256_v38 = vsel %vm3091_vm11, %v3255_v30, %v3251_v15  ;;  %v3260_v10 = vrot.slane %v2792_v32, %v5116_v55  ;;  %2698 = vadd.xlane.f32.xlu1 %v2462_v51  ;;  %v5298_v7 = vpop.f32.mrf.mxu1  ;;  %v2797_v5 = vadd.f32 %v4970_v1, %v2583_v58  ;;  %v2335_v51 = vmax.f32 %v2169_v63, 0.0 }
 0x2ba   : > { %v2340_v45 = vmax.f32 %v2190_v36, 0.0  ;;  %v2585_v46 = vpop.xlane.xlu1 %2584  ;;  %v2465_v32 = vmul.f32 %v5036_v2, %v2331_v12  ;;  %v2338_v39 = vmax.f32 %v2182_v28, 0.0 }
 0x2bb   : > { %v3261_v53 = vsel %vm3098_vm12, %v3260_v10, %v3256_v38  ;;  %v5306_v57 = vpop.f32.mrf.mxu1  ;;  %v2798_v15 = vadd.f32 %v4970_v1, %v2585_v46  ;;  %v3284_v25 = vrot.slane %v2797_v5, %v4984_v20 }
 0x2bc   : > { %v3266_v60 = vsel %vm3105_vm13, %v3265_v44, %v3261_v53  ;;  %v2474_v22 = vmul.f32 %v5036_v2, %v2340_v45  ;;  %v2579_v62 = vpop.xlane.xlu0 %2578  ;;  %v2469_v45 = vmul.f32 %v5036_v2, %v2335_v51 }
 0x2bd   : > { %v3271_v0 = vsel %vm3112_vm14, %v3270_v52, %v3266_v60  ;;  %v2795_v29 = vadd.f32 %v4970_v1, %v2579_v62  ;;  %2710 = vadd.xlane.f32.xlu1 %v2468_v48  ;;  %v4281_v3 = vpop.f32.mrf.mxu1  ;;  %v3289_v36 = vrot.slane %v2798_v15, %v4993_v26 }
 0x2be   : > { %v5316_v4 = vsel %vm3669_vm15, %v3271_v0, %v5217_v13  ;;  %v2581_v8 = vpop.xlane.xlu1 %2580  ;;  %2722 = vadd.xlane.f32.xlu0 %v2474_v22  ;;  %v2214_v27 = vadd.f32 %v5026_v59, %v4281_v3  ;;  %v2333_v22 = vmax.f32 %v2161_v33, 0.0  ;;  %v2185_v33 = vadd.f32 %v5026_v59, %v5274_v61 }
 0x2bf   : > { %v2796_v14 = vadd.f32 %v4970_v1, %v2581_v8  ;;  %v5322_v16 = vpop.f32.mrf.mxu1  ;;  %v3275_v11 = vrot.slane %v2795_v29, %v4988_v21  ;;  %v2177_v61 = vadd.f32 %v5026_v59, %v5281_v56  ;;  %vm3671_vm15 = vcmask 1043459  }
 0x2c0   : > { %v2591_v18 = vpop.xlane.xlu0 %2590  ;;  %v2346_v48 = vmax.f32 %v2214_v27, 0.0 }
 0x2c1   : > { %v3279_v13 = vrot.slane %v2796_v14, %v4998_v31  ;;  %2702 = vadd.xlane.f32.xlu1 %v2464_v9  ;;  %v5326_v19 = vpop.f32.mrf.mxu1  ;;  %v2801_v52 = vadd.f32 %v4970_v1, %v2591_v18  ;;  %v2467_v14 = vmul.f32 %v5036_v2, %v2333_v22  ;;  %v2174_v18 = vadd.f32 %v5026_v59, %v5269_v49 }
 0x2c2   : > { %v2593_v30 = vpop.xlane.xlu1 %2592  ;;  %v2480_v9 = vmul.f32 %v5036_v2, %v2346_v48  ;;  %v2337_v56 = vmax.f32 %v2177_v61, 0.0 }
 0x2c3   : > { %v3280_v58 = vsel %vm3014_vm0, %v3279_v13, %v3275_v11  ;;  %v2208_v38 = vpop.f32.mrf.mxu1  ;;  %v2802_v62 = vadd.f32 %v4970_v1, %v2593_v30  ;;  %v3304_v12 = vrot.slane %v2801_v52, %v5003_v35 }
 0x2c4   : > { %v3285_v10 = vsel %vm3021_vm1, %v3284_v25, %v3280_v58  ;;  %v2209_v42 = vadd.f32 %v5026_v59, %v2208_v38  ;;  %v2587_v44 = vpop.xlane.xlu0 %2586  ;;  %v2336_v58 = vmax.f32 %v2174_v18, 0.0 }
 0x2c5   : > { %v3290_v46 = vsel %vm3028_vm2, %v3289_v36, %v3285_v10  ;;  %v2799_v47 = vadd.f32 %v4970_v1, %v2587_v44  ;;  %2704 = vadd.xlane.f32.xlu1 %v2465_v32  ;;  %v3309_v51 = vrot.slane %v2802_v62, %v5009_v41  ;;  %v2472_v32 = vmul.f32 %v5036_v2, %v2338_v39 }
 0x2c6   : > { %v2345_v53 = vmax.f32 %v2209_v42, 0.0  ;;  %v2589_v60 = vpop.xlane.xlu1 %2588  ;;  %v2470_v52 = vmul.f32 %v5036_v2, %v2336_v58 }
 0x2c7   : > { %v3294_v63 = vrot.slane %v2799_v47, %v5020_v54  ;;  %v2800_v0 = vadd.f32 %v4970_v1, %v2589_v60  ;;  %v2339_v47 = vmax.f32 %v2185_v33, 0.0 }
 0x2c8   : > { %v2479_v29 = vmul.f32 %v5036_v2, %v2345_v53  ;;  %v2599_v3 = vpop.xlane.xlu0 %2598 }
 0x2c9   : > { %v3295_v5 = vsel %vm3035_vm3, %v3294_v63, %v3290_v46  ;;  %v3299_v8 = vrot.slane %v2800_v0, %v5042_v6  ;;  %2712 = vadd.xlane.f32.xlu1 %v2469_v45  ;;  %v2805_v36 = vadd.f32 %v4970_v1, %v2599_v3 }
 0x2ca   : > { %v2601_v15 = vpop.xlane.xlu1 %2600  ;;  %2732 = vadd.xlane.f32.xlu0 %v2479_v29  ;;  %v2473_v29 = vmul.f32 %v5036_v2, %v2339_v47 }
 0x2cb   : > { %v3300_v11 = vsel %vm3042_vm4, %v3299_v8, %v3295_v5  ;;  %v2806_v38 = vadd.f32 %v4970_v1, %v2601_v15  ;;  %v3324_v28 = vrot.slane %v2805_v36, %v5051_v23  ;;  %v2198_v8 = vadd.f32 %v5026_v59, %v5286_v17  ;;  %v4407_v59 = vld [vmem:[%s5648_s4] ss:$0 sm:$0xff] }
 0x2cc   : > { %v3305_v13 = vsel %vm3049_vm5, %v3304_v12, %v3300_v11  ;;  %v2595_v25 = vpop.xlane.xlu0 %2594  ;;  %v2201_v17 = vadd.f32 %v4407_v59, %v5298_v7  ;;  %v4408_v7 = vld [vmem:[%s5649_s5] ss:$0 sm:$0xff] }
 0x2cd   : > { %v3310_v27 = vsel %vm3056_vm6, %v3309_v51, %v3305_v13  ;;  %v2803_v30 = vadd.f32 %v4970_v1, %v2595_v25  ;;  %2708 = vadd.xlane.f32.xlu1 %v2467_v14  ;;  %v3329_v53 = vrot.slane %v2806_v38, %v5054_v24  ;;  %v2471_v51 = vmul.f32 %v5036_v2, %v2337_v56 }
 0x2ce   : > { %v2597_v49 = vpop.xlane.xlu1 %2596  ;;  %2734 = vadd.xlane.f32.xlu0 %v2480_v9  ;;  %v2342_v25 = vmax.f32 %v2198_v8, 0.0  ;;  %v2217_v8 = vadd.f32 %v4407_v59, %v5326_v19 }
 0x2cf   : > { %v3314_v10 = vrot.slane %v2803_v30, %v5065_v40  ;;  %v2804_v42 = vadd.f32 %v4970_v1, %v2597_v49  ;;  %v2193_v49 = vadd.f32 %v4407_v59, %v5306_v57 }
 0x2d0   : > { %v2607_v44 = vpop.xlane.xlu0 %2606 }
 0x2d1   : > { %v3315_v45 = vsel %vm3063_vm7, %v3314_v10, %v3310_v27  ;;  %v3319_v46 = vrot.slane %v2804_v42, %v5073_v50  ;;  %2718 = vadd.xlane.f32.xlu1 %v2472_v32  ;;  %v2809_v3 = vadd.f32 %v4970_v1, %v2607_v44  ;;  %v2476_v42 = vmul.f32 %v4408_v7, %v2342_v25 }
 0x2d2   : > { %v2609_v48 = vpop.xlane.xlu1 %2608  ;;  %v2343_v44 = vmax.f32 %v2201_v17, 0.0  ;;  %v2347_v25 = vmax.f32 %v2217_v8, 0.0 }
 0x2d3   : > { %v3320_v60 = vsel %vm3070_vm8, %v3319_v46, %v3315_v45  ;;  %v2810_v39 = vadd.f32 %v4970_v1, %v2609_v48  ;;  %v3344_v11 = vrot.slane %v2809_v3, %v5099_v34 }
 0x2d4   : > { %v3325_v22 = vsel %vm3077_vm9, %v3324_v28, %v3320_v60  ;;  %v2603_v62 = vpop.xlane.xlu0 %2602  ;;  %v2341_v28 = vmax.f32 %v2193_v49, 0.0 }
 0x2d5   : > { %v3330_v63 = vsel %vm3084_vm10, %v3329_v53, %v3325_v22  ;;  %v2807_v0 = vadd.f32 %v4970_v1, %v2603_v62  ;;  %2714 = vadd.xlane.f32.xlu1 %v2470_v52  ;;  %v3349_v27 = vrot.slane %v2810_v39, %v5103_v37  ;;  %v2477_v53 = vmul.f32 %v4408_v7, %v2343_v44 }
 0x2d6   : > { %v2605_v5 = vpop.xlane.xlu1 %2604  ;;  %v2475_v56 = vmul.f32 %v4408_v7, %v2341_v28 }
 0x2d7   : > { %v3334_v9 = vrot.slane %v2807_v0, %v5108_v43  ;;  %v2808_v12 = vadd.f32 %v4970_v1, %v2605_v5 }
 0x2d8   : > { %v2615_v15 = vpop.xlane.xlu0 %2614 }
 0x2d9   : > { %v3335_v14 = vsel %vm3091_vm11, %v3334_v9, %v3330_v63  ;;  %v3339_v18 = vrot.slane %v2808_v12, %v5116_v55  ;;  %2720 = vadd.xlane.f32.xlu1 %v2473_v29  ;;  %v2813_v58 = vadd.f32 %v4970_v1, %v2615_v15 }
 0x2da   : > { %v2617_v13 = vpop.xlane.xlu1 %2616 }
 0x2db   : > { %v3340_v30 = vsel %vm3098_vm12, %v3339_v18, %v3335_v14  ;;  %v2814_v45 = vadd.f32 %v4970_v1, %v2617_v13  ;;  %v3363_v48 = vrot.slane %v2813_v58, %v4984_v20 }
 0x2dc   : > { %v3345_v32 = vsel %vm3105_vm13, %v3344_v11, %v3340_v30  ;;  %v2611_v33 = vpop.xlane.xlu0 %2610 }
 0x2dd   : > { %v3350_v2 = vsel %vm3112_vm14, %v3349_v27, %v3345_v32  ;;  %v2811_v36 = vadd.f32 %v4970_v1, %v2611_v33  ;;  %2716 = vadd.xlane.f32.xlu1 %v2471_v51  ;;  %v3368_v60 = vrot.slane %v2814_v45, %v4993_v26 }
 0x2de   : > { %v2613_v38 = vpop.xlane.xlu1 %2612  ;;  %v5400_v10 = vsel %vm3671_vm15, %v3350_v2, %v5316_v4  ;;  %v2206_v4 = vadd.f32 %v4407_v59, %v5322_v16  ;;  %vm3673_vm15 = vcmask 1044484  }
 0x2df   : > { %v2812_v46 = vadd.f32 %v4970_v1, %v2613_v38  ;;  %v3354_v61 = vrot.slane %v2811_v36, %v4988_v21  ;;  %v2481_v36 = vmul.f32 %v4408_v7, %v2347_v25 }
 0x2e0   : > { %v2623_v47 = vpop.xlane.xlu0 %2622  ;;  %v2344_v3 = vmax.f32 %v2206_v4, 0.0 }
 0x2e1   : > { %v3358_v57 = vrot.slane %v2812_v46, %v4998_v31  ;;  %2726 = vadd.xlane.f32.xlu1 %v2476_v42  ;;  %v2817_v16 = vadd.f32 %v4970_v1, %v2623_v47 }
 0x2e2   : > { %v2625_v52 = vpop.xlane.xlu1 %2624  ;;  %v2478_v13 = vmul.f32 %v4408_v7, %v2344_v3 }
 0x2e3   : > { %v3359_v22 = vsel %vm3014_vm0, %v3358_v57, %v3354_v61  ;;  %v2818_v39 = vadd.f32 %v4970_v1, %v2625_v52  ;;  %v3383_v51 = vrot.slane %v2817_v16, %v5003_v35 }
 0x2e4   : > { %v3364_v62 = vsel %vm3021_vm1, %v3363_v48, %v3359_v22  ;;  %v2619_v63 = vpop.xlane.xlu0 %2618 }
 0x2e5   : > { %v3369_v0 = vsel %vm3028_vm2, %v3368_v60, %v3364_v62  ;;  %v2815_v29 = vadd.f32 %v4970_v1, %v2619_v63  ;;  %2728 = vadd.xlane.f32.xlu1 %v2477_v53  ;;  %v3388_v17 = vrot.slane %v2818_v39, %v5009_v41 }
 0x2e6   : > { %v2621_v5 = vpop.xlane.xlu1 %2620 }
 0x2e7   : > { %v3373_v9 = vrot.slane %v2815_v29, %v5020_v54  ;;  %v2816_v12 = vadd.f32 %v4970_v1, %v2621_v5 }
 0x2e8   : > { %v2631_v15 = vpop.xlane.xlu0 %2630 }
 0x2e9   : > { %v3374_v14 = vsel %vm3035_vm3, %v3373_v9, %v3369_v0  ;;  %v3378_v18 = vrot.slane %v2816_v12, %v5042_v6  ;;  %2724 = vadd.xlane.f32.xlu1 %v2475_v56  ;;  %v2821_v33 = vadd.f32 %v4970_v1, %v2631_v15 }
 0x2ea   : > { %v2633_v11 = vpop.xlane.xlu1 %2632 }
 0x2eb   : > { %v3379_v19 = vsel %vm3042_vm4, %v3378_v18, %v3374_v14  ;;  %v2822_v49 = vadd.f32 %v4970_v1, %v2633_v11  ;;  %v3403_v46 = vrot.slane %v2821_v33, %v5051_v23 }
 0x2ec   : > { %v3384_v59 = vsel %vm3049_vm5, %v3383_v51, %v3379_v19  ;;  %v2627_v27 = vpop.xlane.xlu0 %2626 }
 0x2ed   : > { %v3389_v30 = vsel %vm3056_vm6, %v3388_v17, %v3384_v59  ;;  %v2819_v32 = vadd.f32 %v4970_v1, %v2627_v27  ;;  %2730 = vadd.xlane.f32.xlu1 %v2478_v13  ;;  %v3408_v61 = vrot.slane %v2822_v49, %v5054_v24 }
 0x2ee   : > { %v2629_v2 = vpop.xlane.xlu1 %2628 }
 0x2ef   : > { %v3393_v58 = vrot.slane %v2819_v32, %v5065_v40  ;;  %v2820_v38 = vadd.f32 %v4970_v1, %v2629_v2 }
 0x2f0   : > { %v2639_v42 = vpop.xlane.xlu0 %2638 }
 0x2f1   : > { %v3394_v44 = vsel %vm3063_vm7, %v3393_v58, %v3389_v30  ;;  %v3398_v45 = vrot.slane %v2820_v38, %v5073_v50  ;;  %2736 = vadd.xlane.f32.xlu1 %v2481_v36  ;;  %v2825_v52 = vadd.f32 %v4970_v1, %v2639_v42 }
 0x2f2   : > { %v2641_v47 = vpop.xlane.xlu1 %2640 }
 0x2f3   : > { %v3399_v57 = vsel %vm3070_vm8, %v3398_v45, %v3394_v44  ;;  %v2826_v60 = vadd.f32 %v4970_v1, %v2641_v47  ;;  %v3423_v56 = vrot.slane %v2825_v52, %v5099_v34 }
 0x2f4   : > { %v3404_v7 = vsel %vm3077_vm9, %v3403_v46, %v3399_v57  ;;  %v2635_v28 = vpop.xlane.xlu0 %2634 }
 0x2f5   : > { %v3409_v4 = vsel %vm3084_vm10, %v3408_v61, %v3404_v7  ;;  %v2823_v48 = vadd.f32 %v4970_v1, %v2635_v28  ;;  %v3428_v16 = vrot.slane %v2826_v60, %v5103_v37 }
 0x2f6   : > { %v2637_v53 = vpop.xlane.xlu1 %2636 }
 0x2f7   : > { %v3413_v22 = vrot.slane %v2823_v48, %v5108_v43  ;;  %v2824_v62 = vadd.f32 %v4970_v1, %v2637_v53 }
 0x2f8   : > { %v2647_v63 = vpop.xlane.xlu0 %2646 }
 0x2f9   : > { %v3414_v0 = vsel %vm3091_vm11, %v3413_v22, %v3409_v4  ;;  %v3418_v29 = vrot.slane %v2824_v62, %v5116_v55  ;;  %v2829_v15 = vadd.f32 %v4970_v1, %v2647_v63 }
 0x2fa   : > { %v2649_v3 = vpop.xlane.xlu1 %2648 }
 0x2fb   : > { %v3419_v5 = vsel %vm3098_vm12, %v3418_v29, %v3414_v0  ;;  %v2830_v51 = vadd.f32 %v4970_v1, %v2649_v3  ;;  %v3442_v19 = vrot.slane %v2829_v15, %v4984_v20 }
 0x2fc   : > { %v3424_v8 = vsel %vm3105_vm13, %v3423_v56, %v3419_v5  ;;  %v2643_v39 = vpop.xlane.xlu0 %2642 }
 0x2fd   : > { %v3429_v9 = vsel %vm3112_vm14, %v3428_v16, %v3424_v8  ;;  %v2827_v12 = vadd.f32 %v4970_v1, %v2643_v39  ;;  %v3447_v27 = vrot.slane %v2830_v51, %v4993_v26 }
 0x2fe   : > { %v2645_v14 = vpop.xlane.xlu1 %2644  ;;  %v5455_v18 = vsel %vm3673_vm15, %v3429_v9, %v5400_v10  ;;  %vm3675_vm15 = vcmask 1045509  }
 0x2ff   : > { %v2828_v11 = vadd.f32 %v4970_v1, %v2645_v14  ;;  %v3433_v25 = vrot.slane %v2827_v12, %v4988_v21 }
 0x300   : > { %v2655_v13 = vpop.xlane.xlu0 %2654 }
 0x301   : > { %v3437_v17 = vrot.slane %v2828_v11, %v4998_v31  ;;  %v2833_v36 = vadd.f32 %v4970_v1, %v2655_v13 }
 0x302   : > { %v2657_v59 = vpop.xlane.xlu1 %2656 }
 0x303   : > { %v3438_v30 = vsel %vm3014_vm0, %v3437_v17, %v3433_v25  ;;  %v2834_v58 = vadd.f32 %v4970_v1, %v2657_v59  ;;  %v3462_v47 = vrot.slane %v2833_v36, %v5003_v35 }
 0x304   : > { %v3443_v32 = vsel %vm3021_vm1, %v3442_v19, %v3438_v30  ;;  %v2651_v10 = vpop.xlane.xlu0 %2650 }
 0x305   : > { %v3448_v33 = vsel %vm3028_vm2, %v3447_v27, %v3443_v32  ;;  %v2831_v2 = vadd.f32 %v4970_v1, %v2651_v10  ;;  %v3467_v57 = vrot.slane %v2834_v58, %v5009_v41 }
 0x306   : > { %v2653_v49 = vpop.xlane.xlu1 %2652 }
 0x307   : > { %v3452_v38 = vrot.slane %v2831_v2, %v5020_v54  ;;  %v2832_v42 = vadd.f32 %v4970_v1, %v2653_v49 }
 0x308   : > { %v2663_v44 = vpop.xlane.xlu0 %2662 }
 0x309   : > { %v3453_v45 = vsel %vm3035_vm3, %v3452_v38, %v3448_v33  ;;  %v3457_v46 = vrot.slane %v2832_v42, %v5042_v6  ;;  %v2837_v53 = vadd.f32 %v4970_v1, %v2663_v44 }
 0x30a   : > { %v2665_v61 = vpop.xlane.xlu1 %2664 }
 0x30b   : > { %v3458_v7 = vsel %vm3042_vm4, %v3457_v46, %v3453_v45  ;;  %v2838_v22 = vadd.f32 %v4970_v1, %v2665_v61  ;;  %v3482_v3 = vrot.slane %v2837_v53, %v5051_v23 }
 0x30c   : > { %v3463_v28 = vsel %vm3049_vm5, %v3462_v47, %v3458_v7  ;;  %v2659_v4 = vpop.xlane.xlu0 %2658 }
 0x30d   : > { %v3468_v48 = vsel %vm3056_vm6, %v3467_v57, %v3463_v28  ;;  %v2835_v52 = vadd.f32 %v4970_v1, %v2659_v4  ;;  %v3487_v8 = vrot.slane %v2838_v22, %v5054_v24 }
 0x30e   : > { %v2661_v60 = vpop.xlane.xlu1 %2660 }
 0x30f   : > { %v3472_v62 = vrot.slane %v2835_v52, %v5065_v40  ;;  %v2836_v63 = vadd.f32 %v4970_v1, %v2661_v60 }
 0x310   : > { %v2667_v0 = vpop.xlane.xlu0 %2666 }
 0x311   : > { %v3473_v29 = vsel %vm3063_vm7, %v3472_v62, %v3468_v48  ;;  %v3477_v56 = vrot.slane %v2836_v63, %v5073_v50  ;;  %v2839_v16 = vadd.f32 %v4970_v1, %v2667_v0 }
 0x312   : > { %v2671_v5 = vpop.xlane.xlu1 %2670 }
 0x313   : > { %v3478_v39 = vsel %vm3070_vm8, %v3477_v56, %v3473_v29  ;;  %v3492_v15 = vrot.slane %v2839_v16, %v5108_v43  ;;  %v2841_v14 = vadd.f32 %v4970_v1, %v2671_v5 }
 0x314   : > { %v3483_v9 = vsel %vm3077_vm9, %v3482_v3, %v3478_v39 }
 0x315   : > { %v3488_v12 = vsel %vm3084_vm10, %v3487_v8, %v3483_v9  ;;  %v3502_v19 = vrot.slane %v2841_v14, %v5099_v34 }
 0x316   : > { %v2669_v51 = vpop.xlane.xlu1 %2668  ;;  %v3493_v17 = vsel %vm3091_vm11, %v3492_v15, %v3488_v12 }
 0x317   : > { %v2840_v11 = vadd.f32 %v4970_v1, %v2669_v51 }
 0x319   : > { %v3497_v13 = vrot.slane %v2840_v11, %v5116_v55  ;;  %v2681_v25 = vpop.xlane.xlu0 %2680 }
 0x31a   : > { %v2679_v59 = vpop.xlane.xlu1 %2678  ;;  %v2846_v45 = vadd.f32 %v4970_v1, %v2681_v25 }
 0x31b   : > { %v3498_v27 = vsel %vm3098_vm12, %v3497_v13, %v3493_v17  ;;  %v2845_v10 = vadd.f32 %v4970_v1, %v2679_v59 }
 0x31c   : > { %v3503_v30 = vsel %vm3105_vm13, %v3502_v19, %v3498_v27  ;;  %v3526_v57 = vrot.slane %v2846_v45, %v4993_v26 }
 0x31d   : > { %v2677_v32 = vpop.xlane.xlu0 %2676  ;;  %v3521_v38 = vrot.slane %v2845_v10, %v4984_v20 }
 0x31e   : > { %v2675_v33 = vpop.xlane.xlu1 %2674  ;;  %v2844_v2 = vadd.f32 %v4970_v1, %v2677_v32 }
 0x31f   : > { %v2843_v36 = vadd.f32 %v4970_v1, %v2675_v33 }
 0x320   : > { %v3516_v49 = vrot.slane %v2844_v2, %v4998_v31 }
 0x321   : > { %v3512_v58 = vrot.slane %v2843_v36, %v4988_v21 }
 0x322   : > { %v2687_v42 = vpop.xlane.xlu1 %2686 }
 0x323   : > { %v3517_v44 = vsel %vm3014_vm0, %v3516_v49, %v3512_v58  ;;  %v2849_v52 = vadd.f32 %v4970_v1, %v2687_v42 }
 0x324   : > { %v3522_v46 = vsel %vm3021_vm1, %v3521_v38, %v3517_v44 }
 0x325   : > { %v3527_v28 = vsel %vm3028_vm2, %v3526_v57, %v3522_v46  ;;  %v3541_v63 = vrot.slane %v2849_v52, %v5003_v35 }
 0x326   : > { %v2683_v47 = vpop.xlane.xlu1 %2682 }
 0x327   : > { %v2847_v61 = vadd.f32 %v4970_v1, %v2683_v47 }
 0x329   : > { %v3531_v7 = vrot.slane %v2847_v61, %v5020_v54 }
 0x32a   : > { %v2689_v4 = vpop.xlane.xlu1 %2688 }
 0x32b   : > { %v3532_v48 = vsel %vm3035_vm3, %v3531_v7, %v3527_v28  ;;  %v2850_v60 = vadd.f32 %v4970_v1, %v2689_v4 }
 0x32d   : > { %v3546_v29 = vrot.slane %v2850_v60, %v5009_v41 }
 0x32e   : > { %v2685_v53 = vpop.xlane.xlu1 %2684 }
 0x32f   : > { %v2848_v22 = vadd.f32 %v4970_v1, %v2685_v53 }
 0x331   : > { %v3536_v62 = vrot.slane %v2848_v22, %v5042_v6 }
 0x332   : > { %v2695_v0 = vpop.xlane.xlu1 %2694 }
 0x333   : > { %v3537_v56 = vsel %vm3042_vm4, %v3536_v62, %v3532_v48  ;;  %v2701_v3 = vpop.xlane.xlu0 %2700  ;;  %v2853_v51 = vadd.f32 %v4970_v1, %v2695_v0 }
 0x334   : > { %v3542_v16 = vsel %vm3049_vm5, %v3541_v63, %v3537_v56 }
 0x335   : > { %v3547_v5 = vsel %vm3056_vm6, %v3546_v29, %v3542_v16  ;;  %v3561_v32 = vrot.slane %v2853_v51, %v5051_v23 }
 0x336   : > { %v2691_v8 = vpop.xlane.xlu1 %2690 }
 0x337   : > { %v2707_v39 = vpop.xlane.xlu0 %2706  ;;  %v2851_v9 = vadd.f32 %v4970_v1, %v2691_v8 }
 0x338   : > { %v2859_v56 = vadd.f32 %v4970_v1, %v2707_v39 }
 0x339   : > { %v3551_v11 = vrot.slane %v2851_v9, %v5065_v40 }
 0x33a   : > { %v2697_v12 = vpop.xlane.xlu1 %2696  ;;  %v3591_v8 = vrot.slane %v2859_v56, %v4988_v21 }
 0x33b   : > { %v2673_v15 = vpop.xlane.xlu0 %2672  ;;  %v3552_v10 = vsel %vm3063_vm7, %v3551_v11, %v3547_v5  ;;  %v2854_v49 = vadd.f32 %v4970_v1, %v2697_v12 }
 0x33c   : > { %v2842_v14 = vadd.f32 %v4970_v1, %v2673_v15 }
 0x33e   : > { %v3507_v13 = vrot.slane %v2842_v14, %v5103_v37  ;;  %v2693_v25 = vpop.xlane.xlu1 %2692 }
 0x33f   : > { %v2852_v17 = vadd.f32 %v4970_v1, %v2693_v25 }
 0x340   : > { %v3508_v19 = vsel %vm3112_vm14, %v3507_v13, %v3503_v30  ;;  %v3566_v30 = vrot.slane %v2854_v49, %v5054_v24 }
 0x341   : > { %v3556_v59 = vrot.slane %v2852_v17, %v5073_v50  ;;  %v3676_v27 = vsel %vm3675_vm15, %v3508_v19, %v5455_v18  ;;  %v2856_v18 = vadd.f32 %v4970_v1, %v2701_v3  ;;  %vm3677_vm15 = vcmask 1046534  }
 0x342   : > { %v2699_v33 = vpop.xlane.xlu1 %2698 }
 0x343   : > { %v3557_v2 = vsel %vm3070_vm8, %v3556_v59, %v3552_v10  ;;  %v2855_v58 = vadd.f32 %v4970_v1, %v2699_v33  ;;  %v3576_v7 = vrot.slane %v2856_v18, %v5116_v55 }
 0x344   : > { %v3562_v36 = vsel %vm3077_vm9, %v3561_v32, %v3557_v2 }
 0x345   : > { %v3571_v42 = vrot.slane %v2855_v58, %v5108_v43  ;;  %v3567_v45 = vsel %vm3084_vm10, %v3566_v30, %v3562_v36 }
 0x346   : > { %v2711_v38 = vpop.xlane.xlu1 %2710 }
 0x347   : > { %v3572_v47 = vsel %vm3091_vm11, %v3571_v42, %v3567_v45  ;;  %v2861_v16 = vadd.f32 %v4970_v1, %v2711_v38  ;;  %v2723_v21 = vpop.xlane.xlu0 %2722 }
 0x348   : > { %v3577_v4 = vsel %vm3098_vm12, %v3576_v7, %v3572_v47 }
 0x349   : > { %v3600_v14 = vrot.slane %v2861_v16, %v4984_v20 }
 0x34a   : > { %v2703_v44 = vpop.xlane.xlu1 %2702 }
 0x34b   : > { %v2857_v46 = vadd.f32 %v4970_v1, %v2703_v44 }
 0x34d   : > { %v3581_v61 = vrot.slane %v2857_v46, %v5099_v34 }
 0x34e   : > { %v2705_v57 = vpop.xlane.xlu1 %2704 }
 0x34f   : > { %v2858_v28 = vadd.f32 %v4970_v1, %v2705_v57  ;;  %v3582_v52 = vsel %vm3105_vm13, %v3581_v61, %v3577_v4 }
 0x351   : > { %v3586_v48 = vrot.slane %v2858_v28, %v5103_v37 }
 0x352   : > { %v2713_v53 = vpop.xlane.xlu1 %2712 }
 0x353   : > { %v3587_v60 = vsel %vm3112_vm14, %v3586_v48, %v3582_v52  ;;  %v2862_v12 = vadd.f32 %v4970_v1, %v2713_v53  ;;  %v2733_v10 = vpop.xlane.xlu0 %2732 }
 0x354   : > { %v5550_v22 = vsel %vm3677_vm15, %v3587_v60, %v3676_v27  ;;  %v2872_v18 = vadd.f32 %v4970_v1, %v2733_v10 }
 0x355   : > { %v3605_v13 = vrot.slane %v2862_v12, %v4993_v26  ;;  %v2867_v26 = vadd.f32 %v4970_v1, %v2723_v21 }
 0x356   : > { %v2709_v62 = vpop.xlane.xlu1 %2708  ;;  %v3655_v28 = vrot.slane %v2872_v18, %v5116_v55 }
 0x357   : > { %v2860_v0 = vadd.f32 %v4970_v1, %v2709_v62  ;;  %v2735_v42 = vpop.xlane.xlu0 %2734 }
 0x358   : > { %v2873_v47 = vadd.f32 %v4970_v1, %v2735_v42 }
 0x359   : > { %v3595_v3 = vrot.slane %v2860_v0, %v4998_v31 }
 0x35a   : > { %v2719_v63 = vpop.xlane.xlu1 %2718  ;;  %v3660_v48 = vrot.slane %v2873_v47, %v5099_v34 }
 0x35b   : > { %v3596_v15 = vsel %vm3014_vm0, %v3595_v3, %v3591_v8  ;;  %v2865_v17 = vadd.f32 %v4970_v1, %v2719_v63  ;;  %vm3679_vm0 = vcmask 1047559  }
 0x35c   : > { %v3601_v39 = vsel %vm3021_vm1, %v3600_v14, %v3596_v15 }
 0x35d   : > { %v3606_v59 = vsel %vm3028_vm2, %v3605_v13, %v3601_v39 }
 0x35e   : > { %v2715_v29 = vpop.xlane.xlu1 %2714 }
 0x35f   : > { %v2863_v9 = vadd.f32 %v4970_v1, %v2715_v29 }
 0x361   : > { %v3610_v31 = vrot.slane %v2863_v9, %v5020_v54  ;;  %v3620_v54 = vrot.slane %v2865_v17, %v5003_v35  ;;  %v3630_v35 = vrot.slane %v2867_v26, %v5065_v40 }
 0x362   : > { %v2721_v5 = vpop.xlane.xlu1 %2720 }
 0x363   : > { %v3611_v20 = vsel %vm3035_vm3, %v3610_v31, %v3606_v59  ;;  %v2866_v27 = vadd.f32 %v4970_v1, %v2721_v5 }
 0x365   : > { %v3625_v2 = vrot.slane %v2866_v27, %v5009_v41 }
 0x366   : > { %v2717_v51 = vpop.xlane.xlu1 %2716 }
 0x367   : > { %v2864_v11 = vadd.f32 %v4970_v1, %v2717_v51 }
 0x369   : > { %v3615_v25 = vrot.slane %v2864_v11, %v5042_v6 }
 0x36a   : > { %v2727_v19 = vpop.xlane.xlu1 %2726 }
 0x36b   : > { %v3616_v32 = vsel %vm3042_vm4, %v3615_v25, %v3611_v20  ;;  %v2869_v36 = vadd.f32 %v4970_v1, %v2727_v19 }
 0x36c   : > { %v3621_v6 = vsel %vm3049_vm5, %v3620_v54, %v3616_v32 }
 0x36d   : > { %v3626_v30 = vsel %vm3056_vm6, %v3625_v2, %v3621_v6  ;;  %v3640_v45 = vrot.slane %v2869_v36, %v5051_v23 }
 0x36e   : > { %v2729_v33 = vpop.xlane.xlu1 %2728  ;;  %v3631_v41 = vsel %vm3063_vm7, %v3630_v35, %v3626_v30 }
 0x36f   : > { %v2870_v58 = vadd.f32 %v4970_v1, %v2729_v33 }
 0x371   : > { %v3645_v61 = vrot.slane %v2870_v58, %v5054_v24 }
 0x372   : > { %v2725_v49 = vpop.xlane.xlu1 %2724 }
 0x373   : > { %v2868_v38 = vadd.f32 %v4970_v1, %v2725_v49 }
 0x375   : > { %v3635_v44 = vrot.slane %v2868_v38, %v5073_v50 }
 0x376   : > { %v2731_v46 = vpop.xlane.xlu1 %2730 }
 0x377   : > { %v3636_v57 = vsel %vm3070_vm8, %v3635_v44, %v3631_v41  ;;  %v2871_v40 = vadd.f32 %v4970_v1, %v2731_v46 }
 0x378   : > { %v3641_v50 = vsel %vm3077_vm9, %v3640_v45, %v3636_v57 }
 0x379   : > { %v3646_v7 = vsel %vm3084_vm10, %v3645_v61, %v3641_v50  ;;  %v3650_v23 = vrot.slane %v2871_v40, %v5108_v43 }
 0x37a   : > { %v2737_v4 = vpop.xlane.xlu1 %2736 }
 0x37b   : > { %v3651_v52 = vsel %vm3091_vm11, %v3650_v23, %v3646_v7  ;;  %v2874_v24 = vadd.f32 %v4970_v1, %v2737_v4 }
 0x37c   : > { %v3656_v53 = vsel %vm3098_vm12, %v3655_v28, %v3651_v52 }
 0x37d   : > { %v3665_v60 = vrot.slane %v2874_v24, %v5103_v37  ;;  %v3661_v62 = vsel %vm3105_vm13, %v3660_v48, %v3656_v53 }
 0x37f   : > { %v3666_v43 = vsel %vm3112_vm14, %v3665_v60, %v3661_v62 }
 0x380   : > { %v3680_v34 = vsel %vm3679_vm0, %v3666_v43, %v5550_v22 }
 0x381   : > { %3682 = vst [vmem:[%s274_s6] sm:$0xff] %v3680_v34 }
 0x382   : > { %4422 = shalt.err (!%p4419_p3)
}
 0x383   : > { %s4423_s16 = scalar_lea.hbm %s5606_s14, 128  ;;  %s4427_s23 = scalar_lea.hbm %s5651_s7, 256 }
 0x384   : > { %p4424_p4 = scmp.ne.s32.totalorder %s5606_s14, %s4423_s16  ;;  %p4428_p9 = scmp.lt.s32.totalorder %s5606_s14, %s5651_s7 }
 0x385   : > { %p4429_p10 = scmp.lt.s32.totalorder %s4427_s23, %s4423_s16 }
 0x386   : > { %p4425_p7 = pnand %p4424_p4, %p4551_p5 }
 0x387   : > { %p4430_p11 = por %p4429_p10, %p4428_p9 }
 0x388   : > { %p4426_p8 = pneg %p4425_p7 }
 0x38a   : > { %p4431_p12 = pnand %p4430_p11, %p4426_p8 }
 0x38c   : > { %4434 = shalt.err (!%p4431_p12)
}
 0x38d   : > { %4283 = dma.vmem_to_hbm [thread:$0]  (%p4551_p5), %s3698_s30, 128, %s5606_s14, %s3684_s15  }
 0x38e PF: > { %p4289_p13 = scmp.ge.s32.totalorder %s4469_s29, 2  ;;  %s3709_s6 = sand.u32 1, %s4457_s26  }
 0x38f   : > { %s3710_s9 = scalar_lea.sflag [#allocation4], %s3709_s6 }
 0x390   : > { %p4286_p0 = pnand %p4289_p13, %p4555_p6 }
 0x392   : > { %p4287_p1 = pneg %p4286_p0 }
 0x394   : > { %4452 = dma.done.wait (%p4287_p1), %s3710_s9, 128  }
 0x395   : > { %4454 = vsyncadd (%p4287_p1), %s3710_s9, 4294967168  ;;  %p19_p2 = scmp.ge.s32.totalorder %s4539_s8, 4   ;;  %s5654_s26 = smov %s4461_s27 }
 0x396   : > { %s5655_s27 = smov %s4465_s28  ;;  %s5656_s28 = smov %s4549_s11 }
 0x397   : > { %s5657_s29 = smov %s4539_s8  ;;  %21 = sbr.rel (!%p19_p2) target bundleno = 6 (0x6), region = 83 }
 0x39c   :  { %3715 = vsyncpa [#allocation4], 1 }
 0x39d   :  { %3717 = vsyncpa [#allocation4 + $0x1], 1 }

</bundles_post_ra>
